<compile_context>
chip_gen: v7x
topology: tpu7x:2x2x1
jax: 0.10.0
libtpu: 0.0.40
codegen_flags: <defaults>
</compile_context>

<pallas_src>
import jax
import jax.numpy as jnp
from jax.experimental import pallas as pl
from jax.experimental.pallas import tpu as pltpu


def _round_up(x, m):
    return ((x + m - 1) // m) * m


def _cdiv(a, b):
    return -(-a // b)


def _mlp_kernel(x_ref,
                w1_ref, b1_ref, w2_ref, b2_ref, w3_ref, b3_ref,
                w4_ref, b4_ref, w5_ref, b5_ref, w6_ref, b6_ref,
                out_ref, acc_ref):
    """Fused 6-layer MLP with a K-tiled first matmul.

    Grid = (batch tiles, K tiles of the layer-1 contraction).  Layer-1 partial
    products accumulate into the f32 VMEM scratch `acc_ref`; on the last K
    step we add the bias, apply ReLU, run layers 2..6 (VMEM-resident) and
    store the logits tile.  Dropout is identity in eval mode and omitted.
    All matmuls accumulate in f32 on the MXU; weights/activations may be bf16.
    """
    k = pl.program_id(1)

    @pl.when(k == 0)
    def _():
        acc_ref[...] = jnp.zeros_like(acc_ref)

    # Layer-1 partial matmul on this (tb, tk) x (tk, h_p) slab.
    acc_ref[...] += jnp.dot(x_ref[...], w1_ref[...],
                            preferred_element_type=jnp.float32)

    @pl.when(k == pl.num_programs(1) - 1)
    def _():
        wdt = w2_ref.dtype
        h = jnp.maximum(acc_ref[...] + b1_ref[...], 0.0)
        for w_ref, b_ref in ((w2_ref, b2_ref), (w3_ref, b3_ref),
                             (w4_ref, b4_ref), (w5_ref, b5_ref)):
            h = jnp.dot(h.astype(wdt), w_ref[...],
                        preferred_element_type=jnp.float32) + b_ref[...]
            h = jnp.maximum(h, 0.0)
        out_ref[...] = (jnp.dot(h.astype(wdt), w6_ref[...],
                                preferred_element_type=jnp.float32)
                        + b6_ref[...])


def two_sentence_model_forward(x, sent1_lengths, sent2_lengths, params,
                               *, block_b=256, use_bf16=True):
    """Forward pass of TwoSentenceModel.

    x: (B, 2, L) int32 token ids.
    sent1_lengths / sent2_lengths: unused (kept for signature parity).
    params: dict with 'embedding' (V, E) and 'wK'/'bK' for K=1..6; wK is
            stored transposed as (in_features, out_features), bK as (1, out).
    """
    del sent1_lengths, sent2_lengths  # unused by the reference forward
    B = x.shape[0]

    wdt = jnp.bfloat16 if use_bf16 else jnp.float32
    wsize = jnp.dtype(wdt).itemsize

    sents = jnp.concatenate([x[:, 0, :], x[:, 1, :]], axis=1)      # (B, 2L)

    # Embedding gather (plain-JAX glue); output already in the streamed dtype
    # so the (B, 2L*E) activation costs half the HBM traffic when bf16.
    # TODO(synk): on v5e, move this gather in-kernel (resident (E,E) table +
    # batch-tiled int32 ids) to avoid the HBM round-trip of the activation.
    embed = jnp.take(params["embedding"].astype(wdt), sents, axis=0)
    embed = embed.reshape(B, -1)                                   # (B, 2*L*E)

    d_in = embed.shape[1]
    hidden = params["w1"].shape[1]
    num_classes = params["w6"].shape[1]

    h_p = _round_up(hidden, 128)
    c_p = _round_up(num_classes, 128)

    # Per-generation VMEM budget (v5e/v6e: 128 MiB, v7x: 64 MiB) minus headroom.
    try:
        vmem_cap = int(pltpu.get_tpu_info().vmem_capacity_bytes)
    except Exception:
        vmem_cap = 64 * 1024 * 1024
    vmem_budget = max(32 * 1024 * 1024, vmem_cap - 8 * 1024 * 1024)

    def pad2(a, rows, cols):
        return jnp.pad(a, ((0, rows - a.shape[0]), (0, cols - a.shape[1])))

    def build(weight_bufs):
        # Resident (constant index_map) layers 2..6 + all biases.
        w_res = (4 * h_p * h_p + h_p * c_p) * wsize
        b_res = 8 * (5 * h_p + c_p) * 4          # (1, X) pads to 8 sublanes
        resident = weight_bufs * (w_res + b_res)

        # K tile of the layer-1 contraction: even split, <=512, lane-aligned
        # (512 fills the 256-wide v6e/v7x MXU; still a multiple of 128 for v5e).
        d128 = _round_up(d_in, 128)
        tk = min(512, _round_up(_cdiv(d128, _cdiv(d128, 512)), 128))

        # Batch tile: even split of B, >=2 tiles when B is big enough so the
        # "parallel" axis actually feeds both v7x TensorCores.
        nb = max(_cdiv(B, block_b), 2 if B > 8 else 1)
        tb = min(block_b, _round_up(max(_cdiv(B, nb), 1), 8))

        def needed(tb_, tk_):
            stream = 2 * (tb_ * tk_ + tk_ * h_p) * wsize  # x + W1 tiles (2 bufs)
            out_b = 2 * tb_ * c_p * 4                     # logits tile (2 bufs)
            acc = tb_ * h_p * 4                           # f32 accumulator
            inter = 2 * tb_ * h_p * 4                     # live intermediates
            return resident + stream + out_b + acc + inter

        # Shrink batch tile, then K tile, until the working set fits VMEM.
        while needed(tb, tk) > vmem_budget and tb > 8:
            tb = max(8, _round_up(tb // 2, 8))
        while needed(tb, tk) > vmem_budget and tk > 128:
            tk = max(128, _round_up(tk // 2, 128))

        b_p = _round_up(B, tb)
        d_in_p = _round_up(d_in, tk)
        n_k = d_in_p // tk

        embed_p = pad2(embed, b_p, d_in_p)
        ws = [pad2(params["w1"], d_in_p, h_p).astype(wdt)]
        bs = [pad2(params["b1"], 1, h_p).astype(jnp.float32)]
        for i in (2, 3, 4, 5):
            ws.append(pad2(params[f"w{i}"], h_p, h_p).astype(wdt))
            bs.append(pad2(params[f"b{i}"], 1, h_p).astype(jnp.float32))
        ws.append(pad2(params["w6"], h_p, c_p).astype(wdt))
        bs.append(pad2(params["b6"], 1, c_p).astype(jnp.float32))

        operands = [embed_p]
        for w, b in zip(ws, bs):
            operands += [w, b]

        def const_spec(shape):
            # Constant index_map -> single buffer is enough (no re-DMA ever).
            if weight_bufs == 1:
                return pl.BlockSpec(shape, lambda i, k: (0, 0),
                                    pipeline_mode=pl.Buffered(1))
            return pl.BlockSpec(shape, lambda i, k: (0, 0))

        in_specs = [
            pl.BlockSpec((tb, tk), lambda i, k: (i, k)),     # x (K-streamed)
            pl.BlockSpec((tk, h_p), lambda i, k: (k, 0)),    # W1 (K-streamed)
            const_spec(bs[0].shape),                         # b1
        ]
        for w, b in zip(ws[1:], bs[1:]):
            in_specs.append(const_spec(w.shape))
            in_specs.append(const_spec(b.shape))
        out_spec = pl.BlockSpec((tb, c_p), lambda i, k: (i, 0))

        w_bytes = sum(int(w.size) * wsize for w in ws)
        b_bytes = sum(int(b.size) * 4 for b in bs)
        cost = pl.CostEstimate(
            flops=2 * b_p * (d_in_p * h_p + 4 * h_p * h_p + h_p * c_p),
            transcendentals=0,
            bytes_accessed=int(embed_p.size) * wsize + w_bytes + b_bytes
            + b_p * c_p * 4)

        vmem_limit = int(min(vmem_budget,
                             max(32 * 1024 * 1024, needed(tb, tk))))

        call = pl.pallas_call(
            _mlp_kernel,
            out_shape=jax.ShapeDtypeStruct((b_p, c_p), jnp.float32),
            grid=(b_p // tb, n_k),
            in_specs=in_specs,
            out_specs=out_spec,
            scratch_shapes=[pltpu.VMEM((tb, h_p), jnp.float32)],
            compiler_params=pltpu.CompilerParams(
                dimension_semantics=("parallel", "arbitrary"),
                vmem_limit_bytes=vmem_limit),
            cost_estimate=cost,
        )
        return call, operands

    try:
        call, operands = build(weight_bufs=1)
        logits_p = call(*operands)
    except Exception:
        # Robustness guard: if single-buffered weight specs (pl.Buffered(1))
        # are rejected by this jax/libtpu build, fall back to the default
        # double-buffered specs (correctness identical, slightly more VMEM).
        call, operands = build(weight_bufs=2)
        logits_p = call(*operands)

    return logits_p[:B, :num_classes]


def init_params(key, hidden_size, num_classes, emb_size, max_sent_length):
    """Deterministic parameter init mirroring the module __init__ shapes."""
    input_size = 2 * emb_size * max_sent_length
    keys = jax.random.split(key, 13)

    def linear(kw, kb, fan_in, fan_out):
        bound = 1.0 / jnp.sqrt(fan_in)
        # stored transposed: (in, out) so the kernel computes x @ W
        w = jax.random.uniform(kw, (fan_in, fan_out), jnp.float32, -bound, bound)
        b = jax.random.uniform(kb, (1, fan_out), jnp.float32, -bound, bound)
        return w, b

    params = {}
    # nn.Embedding(emb_size, emb_size): vocab == emb dim == emb_size
    params["embedding"] = jax.random.normal(keys[0], (emb_size, emb_size),
                                            jnp.float32)
    dims = [(input_size, hidden_size)] + [(hidden_size, hidden_size)] * 4 + \
           [(hidden_size, num_classes)]
    for i, (fi, fo) in enumerate(dims, start=1):
        w, b = linear(keys[2 * i - 1], keys[2 * i], fi, fo)
        params[f"w{i}"] = w
        params[f"b{i}"] = b
    return params


def _reference_forward(x, params):
    """Plain-JAX f32 reference (eval mode, dropout = identity)."""
    B = x.shape[0]
    sents = jnp.concatenate([x[:, 0, :], x[:, 1, :]], axis=1)
    h = jnp.take(params["embedding"], sents, axis=0).reshape(B, -1)
    h = h.astype(jnp.float32)
    for i in range(1, 6):
        h = jnp.maximum(h @ params[f"w{i}"] + params[f"b{i}"], 0.0)
    return h @ params["w6"] + params["b6"]


if __name__ == "__main__":
    # Small shapes consistent with the module's forward.
    B = 2                 # batch
    L = 8                 # max_sent_length
    E = 32                # emb_size (== vocab size, per nn.Embedding(emb_size, emb_size))
    H = 32                # hidden_size
    C = 3                 # num_classes

    key = jax.random.PRNGKey(0)
    k_tok, k_param = jax.random.split(key)

    params = init_params(k_param, H, C, E, L)

    # x: (B, 2, L) token ids in [0, E)
    x = jax.random.randint(k_tok, (B, 2, L), 0, E, dtype=jnp.int32)
    sent1_lengths = jnp.full((B,), L, dtype=jnp.int32)
    sent2_lengths = jnp.full((B,), L, dtype=jnp.int32)

    logits = two_sentence_model_forward(x, sent1_lengths, sent2_lengths, params)
    logits = jax.block_until_ready(logits)

    assert logits.shape == (B, C), logits.shape
    assert logits.dtype == jnp.float32, logits.dtype
    assert bool(jnp.all(jnp.isfinite(logits)))

    ref = jax.block_until_ready(_reference_forward(x, params))
    assert jnp.allclose(logits, ref, rtol=5e-2, atol=5e-2), (logits, ref)

    print("KERNEL_OK")
</pallas_src>

<mosaic_0001>
module attributes {stable_mosaic.version = 11 : i64} {
  func.func @_mlp_kernel(%arg0: i32, %arg1: i32, %arg2: memref<8x512xbf16, #tpu.memory_space<vmem>>, %arg3: memref<512x128xbf16, #tpu.memory_space<vmem>>, %arg4: memref<1x128xf32, #tpu.memory_space<vmem>>, %arg5: memref<128x128xbf16, #tpu.memory_space<vmem>>, %arg6: memref<1x128xf32, #tpu.memory_space<vmem>>, %arg7: memref<128x128xbf16, #tpu.memory_space<vmem>>, %arg8: memref<1x128xf32, #tpu.memory_space<vmem>>, %arg9: memref<128x128xbf16, #tpu.memory_space<vmem>>, %arg10: memref<1x128xf32, #tpu.memory_space<vmem>>, %arg11: memref<128x128xbf16, #tpu.memory_space<vmem>>, %arg12: memref<1x128xf32, #tpu.memory_space<vmem>>, %arg13: memref<128x128xbf16, #tpu.memory_space<vmem>>, %arg14: memref<1x128xf32, #tpu.memory_space<vmem>>, %arg15: memref<8x128xf32, #tpu.memory_space<vmem>>, %arg16: memref<8x128xf32, #tpu.memory_space<vmem>>) attributes {dimension_semantics = [#tpu.dimension_semantics<parallel>, #tpu.dimension_semantics<arbitrary>], iteration_bounds = array<i64: 1, 1>, scalar_prefetch = 0 : i64, scratch_operands = 1 : i64, tpu.core_type = #tpu.core_type<tc>, window_params = [{transform_indices = @transform_0, window_bounds = array<i64: 8, 512>}, {transform_indices = @transform_1, window_bounds = array<i64: 512, 128>}, {pipeline_mode = #tpu.pipeline_mode<synchronous>, transform_indices = @transform_2, window_bounds = array<i64: 1, 128>}, {pipeline_mode = #tpu.pipeline_mode<synchronous>, transform_indices = @transform_3, window_bounds = array<i64: 128, 128>}, {pipeline_mode = #tpu.pipeline_mode<synchronous>, transform_indices = @transform_4, window_bounds = array<i64: 1, 128>}, {pipeline_mode = #tpu.pipeline_mode<synchronous>, transform_indices = @transform_5, window_bounds = array<i64: 128, 128>}, {pipeline_mode = #tpu.pipeline_mode<synchronous>, transform_indices = @transform_6, window_bounds = array<i64: 1, 128>}, {pipeline_mode = #tpu.pipeline_mode<synchronous>, transform_indices = @transform_7, window_bounds = array<i64: 128, 128>}, {pipeline_mode = #tpu.pipeline_mode<synchronous>, transform_indices = @transform_8, window_bounds = array<i64: 1, 128>}, {pipeline_mode = #tpu.pipeline_mode<synchronous>, transform_indices = @transform_9, window_bounds = array<i64: 128, 128>}, {pipeline_mode = #tpu.pipeline_mode<synchronous>, transform_indices = @transform_10, window_bounds = array<i64: 1, 128>}, {pipeline_mode = #tpu.pipeline_mode<synchronous>, transform_indices = @transform_11, window_bounds = array<i64: 128, 128>}, {pipeline_mode = #tpu.pipeline_mode<synchronous>, transform_indices = @transform_12, window_bounds = array<i64: 1, 128>}, {transform_indices = @transform_13, window_bounds = array<i64: 8, 128>}]} {
    %c0_i32 = arith.constant 0 : i32
    %0 = arith.cmpi eq, %arg1, %c0_i32 : i32
    %1 = arith.extui %0 : i1 to i32
    %c0_i32_0 = arith.constant 0 : i32
    %2 = arith.cmpi ne, %1, %c0_i32_0 : i32
    scf.if %2 {
      %cst_10 = arith.constant 0.000000e+00 : f32
      %12 = vector.broadcast %cst_10 : f32 to vector<8x128xf32>
      %c0_11 = arith.constant 0 : index
      %c0_12 = arith.constant 0 : index
      %13 = vector.load %arg16[%c0_11, %c0_12] : memref<8x128xf32, #tpu.memory_space<vmem>>, vector<8x128xf32>
      tpu.vector_store %arg16[%c0_11, %c0_12], %12 {strides = array<i32>} : memref<8x128xf32, #tpu.memory_space<vmem>>, vector<8x128xf32>,
    } else {
    }
    %c0 = arith.constant 0 : index
    %c0_1 = arith.constant 0 : index
    %3 = vector.load %arg16[%c0, %c0_1] : memref<8x128xf32, #tpu.memory_space<vmem>>, vector<8x128xf32>
    %c0_2 = arith.constant 0 : index
    %c0_3 = arith.constant 0 : index
    %4 = vector.load %arg2[%c0_2, %c0_3] : memref<8x512xbf16, #tpu.memory_space<vmem>>, vector<8x512xbf16>
    %c0_4 = arith.constant 0 : index
    %c0_5 = arith.constant 0 : index
    %5 = vector.load %arg3[%c0_4, %c0_5] : memref<512x128xbf16, #tpu.memory_space<vmem>>, vector<512x128xbf16>
    %cst = arith.constant dense<0.000000e+00> : vector<8x128xf32>
    %6 = tpu.matmul %4, %5, %cst {dimension_numbers = #tpu.dot_dimension_numbers<[1], [0], [0], [1], [0, 0, 1, 1], [], []>} : vector<8x512xbf16>, vector<512x128xbf16>, vector<8x128xf32> -> vector<8x128xf32>
    %7 = arith.addf %3, %6 : vector<8x128xf32>
    %c0_6 = arith.constant 0 : index
    %c0_7 = arith.constant 0 : index
    %8 = vector.load %arg16[%c0_6, %c0_7] : memref<8x128xf32, #tpu.memory_space<vmem>>, vector<8x128xf32>
    tpu.vector_store %arg16[%c0_6, %c0_7], %7 {strides = array<i32>} : memref<8x128xf32, #tpu.memory_space<vmem>>, vector<8x128xf32>,
    %c0_i32_8 = arith.constant 0 : i32
    %9 = arith.cmpi eq, %arg1, %c0_i32_8 : i32
    %10 = arith.extui %9 : i1 to i32
    %c0_i32_9 = arith.constant 0 : i32
    %11 = arith.cmpi ne, %10, %c0_i32_9 : i32
    scf.if %11 {
      %c0_10 = arith.constant 0 : index
      %c0_11 = arith.constant 0 : index
      %12 = vector.load %arg16[%c0_10, %c0_11] : memref<8x128xf32, #tpu.memory_space<vmem>>, vector<8x128xf32>
      %c0_12 = arith.constant 0 : index
      %c0_13 = arith.constant 0 : index
      %13 = vector.load %arg4[%c0_12, %c0_13] : memref<1x128xf32, #tpu.memory_space<vmem>>, vector<1x128xf32>
      %14 = vector.broadcast %13 : vector<1x128xf32> to vector<8x128xf32>
      %15 = arith.addf %12, %14 : vector<8x128xf32>
      %cst_14 = arith.constant 0.000000e+00 : f32
      %16 = vector.broadcast %cst_14 : f32 to vector<8x128xf32>
      %17 = arith.maximumf %15, %16 : vector<8x128xf32>
      %18 = arith.truncf %17 : vector<8x128xf32> to vector<8x128xbf16>
      %c0_15 = arith.constant 0 : index
      %c0_16 = arith.constant 0 : index
      %19 = vector.load %arg5[%c0_15, %c0_16] : memref<128x128xbf16, #tpu.memory_space<vmem>>, vector<128x128xbf16>
      %cst_17 = arith.constant dense<0.000000e+00> : vector<8x128xf32>
      %20 = tpu.matmul %18, %19, %cst_17 {dimension_numbers = #tpu.dot_dimension_numbers<[1], [0], [0], [1], [0, 0, 1, 1], [], []>} : vector<8x128xbf16>, vector<128x128xbf16>, vector<8x128xf32> -> vector<8x128xf32>
      %c0_18 = arith.constant 0 : index
      %c0_19 = arith.constant 0 : index
      %21 = vector.load %arg6[%c0_18, %c0_19] : memref<1x128xf32, #tpu.memory_space<vmem>>, vector<1x128xf32>
      %22 = vector.broadcast %21 : vector<1x128xf32> to vector<8x128xf32>
      %23 = arith.addf %20, %22 : vector<8x128xf32>
      %cst_20 = arith.constant 0.000000e+00 : f32
      %24 = vector.broadcast %cst_20 : f32 to vector<8x128xf32>
      %25 = arith.maximumf %23, %24 : vector<8x128xf32>
      %26 = arith.truncf %25 : vector<8x128xf32> to vector<8x128xbf16>
      %c0_21 = arith.constant 0 : index
      %c0_22 = arith.constant 0 : index
      %27 = vector.load %arg7[%c0_21, %c0_22] : memref<128x128xbf16, #tpu.memory_space<vmem>>, vector<128x128xbf16>
      %cst_23 = arith.constant dense<0.000000e+00> : vector<8x128xf32>
      %28 = tpu.matmul %26, %27, %cst_23 {dimension_numbers = #tpu.dot_dimension_numbers<[1], [0], [0], [1], [0, 0, 1, 1], [], []>} : vector<8x128xbf16>, vector<128x128xbf16>, vector<8x128xf32> -> vector<8x128xf32>
      %c0_24 = arith.constant 0 : index
      %c0_25 = arith.constant 0 : index
      %29 = vector.load %arg8[%c0_24, %c0_25] : memref<1x128xf32, #tpu.memory_space<vmem>>, vector<1x128xf32>
      %30 = vector.broadcast %29 : vector<1x128xf32> to vector<8x128xf32>
      %31 = arith.addf %28, %30 : vector<8x128xf32>
      %cst_26 = arith.constant 0.000000e+00 : f32
      %32 = vector.broadcast %cst_26 : f32 to vector<8x128xf32>
      %33 = arith.maximumf %31, %32 : vector<8x128xf32>
      %34 = arith.truncf %33 : vector<8x128xf32> to vector<8x128xbf16>
      %c0_27 = arith.constant 0 : index
      %c0_28 = arith.constant 0 : index
      %35 = vector.load %arg9[%c0_27, %c0_28] : memref<128x128xbf16, #tpu.memory_space<vmem>>, vector<128x128xbf16>
      %cst_29 = arith.constant dense<0.000000e+00> : vector<8x128xf32>
      %36 = tpu.matmul %34, %35, %cst_29 {dimension_numbers = #tpu.dot_dimension_numbers<[1], [0], [0], [1], [0, 0, 1, 1], [], []>} : vector<8x128xbf16>, vector<128x128xbf16>, vector<8x128xf32> -> vector<8x128xf32>
      %c0_30 = arith.constant 0 : index
      %c0_31 = arith.constant 0 : index
      %37 = vector.load %arg10[%c0_30, %c0_31] : memref<1x128xf32, #tpu.memory_space<vmem>>, vector<1x128xf32>
      %38 = vector.broadcast %37 : vector<1x128xf32> to vector<8x128xf32>
      %39 = arith.addf %36, %38 : vector<8x128xf32>
      %cst_32 = arith.constant 0.000000e+00 : f32
      %40 = vector.broadcast %cst_32 : f32 to vector<8x128xf32>
      %41 = arith.maximumf %39, %40 : vector<8x128xf32>
      %42 = arith.truncf %41 : vector<8x128xf32> to vector<8x128xbf16>
      %c0_33 = arith.constant 0 : index
      %c0_34 = arith.constant 0 : index
      %43 = vector.load %arg11[%c0_33, %c0_34] : memref<128x128xbf16, #tpu.memory_space<vmem>>, vector<128x128xbf16>
      %cst_35 = arith.constant dense<0.000000e+00> : vector<8x128xf32>
      %44 = tpu.matmul %42, %43, %cst_35 {dimension_numbers = #tpu.dot_dimension_numbers<[1], [0], [0], [1], [0, 0, 1, 1], [], []>} : vector<8x128xbf16>, vector<128x128xbf16>, vector<8x128xf32> -> vector<8x128xf32>
      %c0_36 = arith.constant 0 : index
      %c0_37 = arith.constant 0 : index
      %45 = vector.load %arg12[%c0_36, %c0_37] : memref<1x128xf32, #tpu.memory_space<vmem>>, vector<1x128xf32>
      %46 = vector.broadcast %45 : vector<1x128xf32> to vector<8x128xf32>
      %47 = arith.addf %44, %46 : vector<8x128xf32>
      %cst_38 = arith.constant 0.000000e+00 : f32
      %48 = vector.broadcast %cst_38 : f32 to vector<8x128xf32>
      %49 = arith.maximumf %47, %48 : vector<8x128xf32>
      %50 = arith.truncf %49 : vector<8x128xf32> to vector<8x128xbf16>
      %c0_39 = arith.constant 0 : index
      %c0_40 = arith.constant 0 : index
      %51 = vector.load %arg13[%c0_39, %c0_40] : memref<128x128xbf16, #tpu.memory_space<vmem>>, vector<128x128xbf16>
      %cst_41 = arith.constant dense<0.000000e+00> : vector<8x128xf32>
      %52 = tpu.matmul %50, %51, %cst_41 {dimension_numbers = #tpu.dot_dimension_numbers<[1], [0], [0], [1], [0, 0, 1, 1], [], []>} : vector<8x128xbf16>, vector<128x128xbf16>, vector<8x128xf32> -> vector<8x128xf32>
      %c0_42 = arith.constant 0 : index
      %c0_43 = arith.constant 0 : index
      %53 = vector.load %arg14[%c0_42, %c0_43] : memref<1x128xf32, #tpu.memory_space<vmem>>, vector<1x128xf32>
      %54 = vector.broadcast %53 : vector<1x128xf32> to vector<8x128xf32>
      %55 = arith.addf %52, %54 : vector<8x128xf32>
      %c0_44 = arith.constant 0 : index
      %c0_45 = arith.constant 0 : index
      %56 = vector.load %arg15[%c0_44, %c0_45] : memref<8x128xf32, #tpu.memory_space<vmem>>, vector<8x128xf32>
      tpu.vector_store %arg15[%c0_44, %c0_45], %55 {strides = array<i32>} : memref<8x128xf32, #tpu.memory_space<vmem>>, vector<8x128xf32>,
    } else {
    }
    return
  }
  func.func @transform_0(%arg0: i32, %arg1: i32) -> (i32, i32) {
    %c0_i32 = arith.constant 0 : i32
    return %arg0, %arg1 : i32, i32
  }
  func.func @transform_1(%arg0: i32, %arg1: i32) -> (i32, i32) {
    %c0_i32 = arith.constant 0 : i32
    %c0_i32_0 = arith.constant 0 : i32
    return %arg1, %c0_i32 : i32, i32
  }
  func.func @transform_2(%arg0: i32, %arg1: i32) -> (i32, i32) {
    %c0_i32 = arith.constant 0 : i32
    %c0_i32_0 = arith.constant 0 : i32
    %c0_i32_1 = arith.constant 0 : i32
    return %c0_i32, %c0_i32_0 : i32, i32
  }
  func.func @transform_3(%arg0: i32, %arg1: i32) -> (i32, i32) {
    %c0_i32 = arith.constant 0 : i32
    %c0_i32_0 = arith.constant 0 : i32
    %c0_i32_1 = arith.constant 0 : i32
    return %c0_i32, %c0_i32_0 : i32, i32
  }
  func.func @transform_4(%arg0: i32, %arg1: i32) -> (i32, i32) {
    %c0_i32 = arith.constant 0 : i32
    %c0_i32_0 = arith.constant 0 : i32
    %c0_i32_1 = arith.constant 0 : i32
    return %c0_i32, %c0_i32_0 : i32, i32
  }
  func.func @transform_5(%arg0: i32, %arg1: i32) -> (i32, i32) {
    %c0_i32 = arith.constant 0 : i32
    %c0_i32_0 = arith.constant 0 : i32
    %c0_i32_1 = arith.constant 0 : i32
    return %c0_i32, %c0_i32_0 : i32, i32
  }
  func.func @transform_6(%arg0: i32, %arg1: i32) -> (i32, i32) {
    %c0_i32 = arith.constant 0 : i32
    %c0_i32_0 = arith.constant 0 : i32
    %c0_i32_1 = arith.constant 0 : i32
    return %c0_i32, %c0_i32_0 : i32, i32
  }
  func.func @transform_7(%arg0: i32, %arg1: i32) -> (i32, i32) {
    %c0_i32 = arith.constant 0 : i32
    %c0_i32_0 = arith.constant 0 : i32
    %c0_i32_1 = arith.constant 0 : i32
    return %c0_i32, %c0_i32_0 : i32, i32
  }
  func.func @transform_8(%arg0: i32, %arg1: i32) -> (i32, i32) {
    %c0_i32 = arith.constant 0 : i32
    %c0_i32_0 = arith.constant 0 : i32
    %c0_i32_1 = arith.constant 0 : i32
    return %c0_i32, %c0_i32_0 : i32, i32
  }
  func.func @transform_9(%arg0: i32, %arg1: i32) -> (i32, i32) {
    %c0_i32 = arith.constant 0 : i32
    %c0_i32_0 = arith.constant 0 : i32
    %c0_i32_1 = arith.constant 0 : i32
    return %c0_i32, %c0_i32_0 : i32, i32
  }
  func.func @transform_10(%arg0: i32, %arg1: i32) -> (i32, i32) {
    %c0_i32 = arith.constant 0 : i32
    %c0_i32_0 = arith.constant 0 : i32
    %c0_i32_1 = arith.constant 0 : i32
    return %c0_i32, %c0_i32_0 : i32, i32
  }
  func.func @transform_11(%arg0: i32, %arg1: i32) -> (i32, i32) {
    %c0_i32 = arith.constant 0 : i32
    %c0_i32_0 = arith.constant 0 : i32
    %c0_i32_1 = arith.constant 0 : i32
    return %c0_i32, %c0_i32_0 : i32, i32
  }
  func.func @transform_12(%arg0: i32, %arg1: i32) -> (i32, i32) {
    %c0_i32 = arith.constant 0 : i32
    %c0_i32_0 = arith.constant 0 : i32
    %c0_i32_1 = arith.constant 0 : i32
    return %c0_i32, %c0_i32_0 : i32, i32
  }
  func.func @transform_13(%arg0: i32, %arg1: i32) -> (i32, i32) {
    %c0_i32 = arith.constant 0 : i32
    %c0_i32_0 = arith.constant 0 : i32
    return %arg0, %c0_i32 : i32, i32
  }
}

module attributes {stable_mosaic.version = 11 : i64} {
  func.func @_mlp_kernel(%arg0: i32, %arg1: i32, %arg2: memref<8x512xbf16, #tpu.memory_space<vmem>>, %arg3: memref<512x128xbf16, #tpu.memory_space<vmem>>, %arg4: memref<1x128xf32, #tpu.memory_space<vmem>>, %arg5: memref<128x128xbf16, #tpu.memory_space<vmem>>, %arg6: memref<1x128xf32, #tpu.memory_space<vmem>>, %arg7: memref<128x128xbf16, #tpu.memory_space<vmem>>, %arg8: memref<1x128xf32, #tpu.memory_space<vmem>>, %arg9: memref<128x128xbf16, #tpu.memory_space<vmem>>, %arg10: memref<1x128xf32, #tpu.memory_space<vmem>>, %arg11: memref<128x128xbf16, #tpu.memory_space<vmem>>, %arg12: memref<1x128xf32, #tpu.memory_space<vmem>>, %arg13: memref<128x128xbf16, #tpu.memory_space<vmem>>, %arg14: memref<1x128xf32, #tpu.memory_space<vmem>>, %arg15: memref<8x128xf32, #tpu.memory_space<vmem>>, %arg16: memref<8x128xf32, #tpu.memory_space<vmem>>) attributes {dimension_semantics = [#tpu.dimension_semantics<parallel>, #tpu.dimension_semantics<arbitrary>], iteration_bounds = array<i64: 1, 1>, scalar_prefetch = 0 : i64, scratch_operands = 1 : i64, tpu.core_type = #tpu.core_type<tc>, window_params = [{transform_indices = @transform_0, window_bounds = array<i64: 8, 512>}, {transform_indices = @transform_1, window_bounds = array<i64: 512, 128>}, {pipeline_mode = #tpu.pipeline_mode<synchronous>, transform_indices = @transform_2, window_bounds = array<i64: 1, 128>}, {pipeline_mode = #tpu.pipeline_mode<synchronous>, transform_indices = @transform_3, window_bounds = array<i64: 128, 128>}, {pipeline_mode = #tpu.pipeline_mode<synchronous>, transform_indices = @transform_4, window_bounds = array<i64: 1, 128>}, {pipeline_mode = #tpu.pipeline_mode<synchronous>, transform_indices = @transform_5, window_bounds = array<i64: 128, 128>}, {pipeline_mode = #tpu.pipeline_mode<synchronous>, transform_indices = @transform_6, window_bounds = array<i64: 1, 128>}, {pipeline_mode = #tpu.pipeline_mode<synchronous>, transform_indices = @transform_7, window_bounds = array<i64: 128, 128>}, {pipeline_mode = #tpu.pipeline_mode<synchronous>, transform_indices = @transform_8, window_bounds = array<i64: 1, 128>}, {pipeline_mode = #tpu.pipeline_mode<synchronous>, transform_indices = @transform_9, window_bounds = array<i64: 128, 128>}, {pipeline_mode = #tpu.pipeline_mode<synchronous>, transform_indices = @transform_10, window_bounds = array<i64: 1, 128>}, {pipeline_mode = #tpu.pipeline_mode<synchronous>, transform_indices = @transform_11, window_bounds = array<i64: 128, 128>}, {pipeline_mode = #tpu.pipeline_mode<synchronous>, transform_indices = @transform_12, window_bounds = array<i64: 1, 128>}, {transform_indices = @transform_13, window_bounds = array<i64: 8, 128>}]} {
    %c0_i32 = arith.constant 0 : i32
    %0 = arith.cmpi eq, %arg1, %c0_i32 : i32
    %1 = arith.extui %0 : i1 to i32
    %c0_i32_0 = arith.constant 0 : i32
    %2 = arith.cmpi ne, %1, %c0_i32_0 : i32
    scf.if %2 {
      %cst_10 = arith.constant 0.000000e+00 : f32
      %12 = vector.broadcast %cst_10 : f32 to vector<8x128xf32>
      %c0_11 = arith.constant 0 : index
      %c0_12 = arith.constant 0 : index
      %13 = vector.load %arg16[%c0_11, %c0_12] : memref<8x128xf32, #tpu.memory_space<vmem>>, vector<8x128xf32>
      tpu.vector_store %arg16[%c0_11, %c0_12], %12 {strides = array<i32>} : memref<8x128xf32, #tpu.memory_space<vmem>>, vector<8x128xf32>,
    } else {
    }
    %c0 = arith.constant 0 : index
    %c0_1 = arith.constant 0 : index
    %3 = vector.load %arg16[%c0, %c0_1] : memref<8x128xf32, #tpu.memory_space<vmem>>, vector<8x128xf32>
    %c0_2 = arith.constant 0 : index
    %c0_3 = arith.constant 0 : index
    %4 = vector.load %arg2[%c0_2, %c0_3] : memref<8x512xbf16, #tpu.memory_space<vmem>>, vector<8x512xbf16>
    %c0_4 = arith.constant 0 : index
    %c0_5 = arith.constant 0 : index
    %5 = vector.load %arg3[%c0_4, %c0_5] : memref<512x128xbf16, #tpu.memory_space<vmem>>, vector<512x128xbf16>
    %cst = arith.constant dense<0.000000e+00> : vector<8x128xf32>
    %6 = tpu.matmul %4, %5, %cst {dimension_numbers = #tpu.dot_dimension_numbers<[1], [0], [0], [1], [0, 0, 1, 1], [], []>} : vector<8x512xbf16>, vector<512x128xbf16>, vector<8x128xf32> -> vector<8x128xf32>
    %7 = arith.addf %3, %6 : vector<8x128xf32>
    %c0_6 = arith.constant 0 : index
    %c0_7 = arith.constant 0 : index
    %8 = vector.load %arg16[%c0_6, %c0_7] : memref<8x128xf32, #tpu.memory_space<vmem>>, vector<8x128xf32>
    tpu.vector_store %arg16[%c0_6, %c0_7], %7 {strides = array<i32>} : memref<8x128xf32, #tpu.memory_space<vmem>>, vector<8x128xf32>,
    %c0_i32_8 = arith.constant 0 : i32
    %9 = arith.cmpi eq, %arg1, %c0_i32_8 : i32
    %10 = arith.extui %9 : i1 to i32
    %c0_i32_9 = arith.constant 0 : i32
    %11 = arith.cmpi ne, %10, %c0_i32_9 : i32
    scf.if %11 {
      %c0_10 = arith.constant 0 : index
      %c0_11 = arith.constant 0 : index
      %12 = vector.load %arg16[%c0_10, %c0_11] : memref<8x128xf32, #tpu.memory_space<vmem>>, vector<8x128xf32>
      %c0_12 = arith.constant 0 : index
      %c0_13 = arith.constant 0 : index
      %13 = vector.load %arg4[%c0_12, %c0_13] : memref<1x128xf32, #tpu.memory_space<vmem>>, vector<1x128xf32>
      %14 = vector.broadcast %13 : vector<1x128xf32> to vector<8x128xf32>
      %15 = arith.addf %12, %14 : vector<8x128xf32>
      %cst_14 = arith.constant 0.000000e+00 : f32
      %16 = vector.broadcast %cst_14 : f32 to vector<8x128xf32>
      %17 = arith.maximumf %15, %16 : vector<8x128xf32>
      %18 = arith.truncf %17 : vector<8x128xf32> to vector<8x128xbf16>
      %c0_15 = arith.constant 0 : index
      %c0_16 = arith.constant 0 : index
      %19 = vector.load %arg5[%c0_15, %c0_16] : memref<128x128xbf16, #tpu.memory_space<vmem>>, vector<128x128xbf16>
      %cst_17 = arith.constant dense<0.000000e+00> : vector<8x128xf32>
      %20 = tpu.matmul %18, %19, %cst_17 {dimension_numbers = #tpu.dot_dimension_numbers<[1], [0], [0], [1], [0, 0, 1, 1], [], []>} : vector<8x128xbf16>, vector<128x128xbf16>, vector<8x128xf32> -> vector<8x128xf32>
      %c0_18 = arith.constant 0 : index
      %c0_19 = arith.constant 0 : index
      %21 = vector.load %arg6[%c0_18, %c0_19] : memref<1x128xf32, #tpu.memory_space<vmem>>, vector<1x128xf32>
      %22 = vector.broadcast %21 : vector<1x128xf32> to vector<8x128xf32>
      %23 = arith.addf %20, %22 : vector<8x128xf32>
      %cst_20 = arith.constant 0.000000e+00 : f32
      %24 = vector.broadcast %cst_20 : f32 to vector<8x128xf32>
      %25 = arith.maximumf %23, %24 : vector<8x128xf32>
      %26 = arith.truncf %25 : vector<8x128xf32> to vector<8x128xbf16>
      %c0_21 = arith.constant 0 : index
      %c0_22 = arith.constant 0 : index
      %27 = vector.load %arg7[%c0_21, %c0_22] : memref<128x128xbf16, #tpu.memory_space<vmem>>, vector<128x128xbf16>
      %cst_23 = arith.constant dense<0.000000e+00> : vector<8x128xf32>
      %28 = tpu.matmul %26, %27, %cst_23 {dimension_numbers = #tpu.dot_dimension_numbers<[1], [0], [0], [1], [0, 0, 1, 1], [], []>} : vector<8x128xbf16>, vector<128x128xbf16>, vector<8x128xf32> -> vector<8x128xf32>
      %c0_24 = arith.constant 0 : index
      %c0_25 = arith.constant 0 : index
      %29 = vector.load %arg8[%c0_24, %c0_25] : memref<1x128xf32, #tpu.memory_space<vmem>>, vector<1x128xf32>
      %30 = vector.broadcast %29 : vector<1x128xf32> to vector<8x128xf32>
      %31 = arith.addf %28, %30 : vector<8x128xf32>
      %cst_26 = arith.constant 0.000000e+00 : f32
      %32 = vector.broadcast %cst_26 : f32 to vector<8x128xf32>
      %33 = arith.maximumf %31, %32 : vector<8x128xf32>
      %34 = arith.truncf %33 : vector<8x128xf32> to vector<8x128xbf16>
      %c0_27 = arith.constant 0 : index
      %c0_28 = arith.constant 0 : index
      %35 = vector.load %arg9[%c0_27, %c0_28] : memref<128x128xbf16, #tpu.memory_space<vmem>>, vector<128x128xbf16>
      %cst_29 = arith.constant dense<0.000000e+00> : vector<8x128xf32>
      %36 = tpu.matmul %34, %35, %cst_29 {dimension_numbers = #tpu.dot_dimension_numbers<[1], [0], [0], [1], [0, 0, 1, 1], [], []>} : vector<8x128xbf16>, vector<128x128xbf16>, vector<8x128xf32> -> vector<8x128xf32>
      %c0_30 = arith.constant 0 : index
      %c0_31 = arith.constant 0 : index
      %37 = vector.load %arg10[%c0_30, %c0_31] : memref<1x128xf32, #tpu.memory_space<vmem>>, vector<1x128xf32>
      %38 = vector.broadcast %37 : vector<1x128xf32> to vector<8x128xf32>
      %39 = arith.addf %36, %38 : vector<8x128xf32>
      %cst_32 = arith.constant 0.000000e+00 : f32
      %40 = vector.broadcast %cst_32 : f32 to vector<8x128xf32>
      %41 = arith.maximumf %39, %40 : vector<8x128xf32>
      %42 = arith.truncf %41 : vector<8x128xf32> to vector<8x128xbf16>
      %c0_33 = arith.constant 0 : index
      %c0_34 = arith.constant 0 : index
      %43 = vector.load %arg11[%c0_33, %c0_34] : memref<128x128xbf16, #tpu.memory_space<vmem>>, vector<128x128xbf16>
      %cst_35 = arith.constant dense<0.000000e+00> : vector<8x128xf32>
      %44 = tpu.matmul %42, %43, %cst_35 {dimension_numbers = #tpu.dot_dimension_numbers<[1], [0], [0], [1], [0, 0, 1, 1], [], []>} : vector<8x128xbf16>, vector<128x128xbf16>, vector<8x128xf32> -> vector<8x128xf32>
      %c0_36 = arith.constant 0 : index
      %c0_37 = arith.constant 0 : index
      %45 = vector.load %arg12[%c0_36, %c0_37] : memref<1x128xf32, #tpu.memory_space<vmem>>, vector<1x128xf32>
      %46 = vector.broadcast %45 : vector<1x128xf32> to vector<8x128xf32>
      %47 = arith.addf %44, %46 : vector<8x128xf32>
      %cst_38 = arith.constant 0.000000e+00 : f32
      %48 = vector.broadcast %cst_38 : f32 to vector<8x128xf32>
      %49 = arith.maximumf %47, %48 : vector<8x128xf32>
      %50 = arith.truncf %49 : vector<8x128xf32> to vector<8x128xbf16>
      %c0_39 = arith.constant 0 : index
      %c0_40 = arith.constant 0 : index
      %51 = vector.load %arg13[%c0_39, %c0_40] : memref<128x128xbf16, #tpu.memory_space<vmem>>, vector<128x128xbf16>
      %cst_41 = arith.constant dense<0.000000e+00> : vector<8x128xf32>
      %52 = tpu.matmul %50, %51, %cst_41 {dimension_numbers = #tpu.dot_dimension_numbers<[1], [0], [0], [1], [0, 0, 1, 1], [], []>} : vector<8x128xbf16>, vector<128x128xbf16>, vector<8x128xf32> -> vector<8x128xf32>
      %c0_42 = arith.constant 0 : index
      %c0_43 = arith.constant 0 : index
      %53 = vector.load %arg14[%c0_42, %c0_43] : memref<1x128xf32, #tpu.memory_space<vmem>>, vector<1x128xf32>
      %54 = vector.broadcast %53 : vector<1x128xf32> to vector<8x128xf32>
      %55 = arith.addf %52, %54 : vector<8x128xf32>
      %c0_44 = arith.constant 0 : index
      %c0_45 = arith.constant 0 : index
      %56 = vector.load %arg15[%c0_44, %c0_45] : memref<8x128xf32, #tpu.memory_space<vmem>>, vector<8x128xf32>
      tpu.vector_store %arg15[%c0_44, %c0_45], %55 {strides = array<i32>} : memref<8x128xf32, #tpu.memory_space<vmem>>, vector<8x128xf32>,
    } else {
    }
    return
  }
  func.func @transform_0(%arg0: i32, %arg1: i32) -> (i32, i32) {
    %c0_i32 = arith.constant 0 : i32
    return %arg0, %arg1 : i32, i32
  }
  func.func @transform_1(%arg0: i32, %arg1: i32) -> (i32, i32) {
    %c0_i32 = arith.constant 0 : i32
    %c0_i32_0 = arith.constant 0 : i32
    return %arg1, %c0_i32 : i32, i32
  }
  func.func @transform_2(%arg0: i32, %arg1: i32) -> (i32, i32) {
    %c0_i32 = arith.constant 0 : i32
    %c0_i32_0 = arith.constant 0 : i32
    %c0_i32_1 = arith.constant 0 : i32
    return %c0_i32, %c0_i32_0 : i32, i32
  }
  func.func @transform_3(%arg0: i32, %arg1: i32) -> (i32, i32) {
    %c0_i32 = arith.constant 0 : i32
    %c0_i32_0 = arith.constant 0 : i32
    %c0_i32_1 = arith.constant 0 : i32
    return %c0_i32, %c0_i32_0 : i32, i32
  }
  func.func @transform_4(%arg0: i32, %arg1: i32) -> (i32, i32) {
    %c0_i32 = arith.constant 0 : i32
    %c0_i32_0 = arith.constant 0 : i32
    %c0_i32_1 = arith.constant 0 : i32
    return %c0_i32, %c0_i32_0 : i32, i32
  }
  func.func @transform_5(%arg0: i32, %arg1: i32) -> (i32, i32) {
    %c0_i32 = arith.constant 0 : i32
    %c0_i32_0 = arith.constant 0 : i32
    %c0_i32_1 = arith.constant 0 : i32
    return %c0_i32, %c0_i32_0 : i32, i32
  }
  func.func @transform_6(%arg0: i32, %arg1: i32) -> (i32, i32) {
    %c0_i32 = arith.constant 0 : i32
    %c0_i32_0 = arith.constant 0 : i32
    %c0_i32_1 = arith.constant 0 : i32
    return %c0_i32, %c0_i32_0 : i32, i32
  }
  func.func @transform_7(%arg0: i32, %arg1: i32) -> (i32, i32) {
    %c0_i32 = arith.constant 0 : i32
    %c0_i32_0 = arith.constant 0 : i32
    %c0_i32_1 = arith.constant 0 : i32
    return %c0_i32, %c0_i32_0 : i32, i32
  }
  func.func @transform_8(%arg0: i32, %arg1: i32) -> (i32, i32) {
    %c0_i32 = arith.constant 0 : i32
    %c0_i32_0 = arith.constant 0 : i32
    %c0_i32_1 = arith.constant 0 : i32
    return %c0_i32, %c0_i32_0 : i32, i32
  }
  func.func @transform_9(%arg0: i32, %arg1: i32) -> (i32, i32) {
    %c0_i32 = arith.constant 0 : i32
    %c0_i32_0 = arith.constant 0 : i32
    %c0_i32_1 = arith.constant 0 : i32
    return %c0_i32, %c0_i32_0 : i32, i32
  }
  func.func @transform_10(%arg0: i32, %arg1: i32) -> (i32, i32) {
    %c0_i32 = arith.constant 0 : i32
    %c0_i32_0 = arith.constant 0 : i32
    %c0_i32_1 = arith.constant 0 : i32
    return %c0_i32, %c0_i32_0 : i32, i32
  }
  func.func @transform_11(%arg0: i32, %arg1: i32) -> (i32, i32) {
    %c0_i32 = arith.constant 0 : i32
    %c0_i32_0 = arith.constant 0 : i32
    %c0_i32_1 = arith.constant 0 : i32
    return %c0_i32, %c0_i32_0 : i32, i32
  }
  func.func @transform_12(%arg0: i32, %arg1: i32) -> (i32, i32) {
    %c0_i32 = arith.constant 0 : i32
    %c0_i32_0 = arith.constant 0 : i32
    %c0_i32_1 = arith.constant 0 : i32
    return %c0_i32, %c0_i32_0 : i32, i32
  }
  func.func @transform_13(%arg0: i32, %arg1: i32) -> (i32, i32) {
    %c0_i32 = arith.constant 0 : i32
    %c0_i32_0 = arith.constant 0 : i32
    return %arg0, %c0_i32 : i32, i32
  }
}

</mosaic_0001>

<bundles_post_ra>
// kernel: tpu_custom_call.1
= control target key start
LH: loop header
LB: loop body
LE: loop exit
PB: predicated region body
PF: predicated region fallthrough
CT: control target
= control target key end

     0   :  { %18 = vsyncpa [#allocation4], 0  ;;  %s1904_s0 = inlined_call_operand.hbm [shape: bf16[8,512], index: 0, kind: input, shape index: {}]   ;;  %s1905_s1 = inlined_call_operand.hbm [shape: bf16[512,128], index: 1, kind: input, shape index: {}]   ;;  %s1906_s2 = inlined_call_operand.vmem [shape: f32[1,128], index: 2, kind: input, shape index: {}]   ;;  %s1907_s3 = inlined_call_operand.hbm [shape: bf16[128,128], index: 3, kind: input, shape index: {}]   ;;  %s1908_s4 = inlined_call_operand.vmem [shape: f32[1,128], index: 4, kind: input, shape index: {}]   ;;  %s1909_s5 = inlined_call_operand.hbm [shape: bf16[128,128], index: 5, kind: input, shape index: {}]   ;;  %s1910_s6 = inlined_call_operand.vmem [shape: f32[1,128], index: 6, kind: input, shape index: {}]   ;;  %s1911_s7 = inlined_call_operand.hbm [shape: bf16[128,128], index: 7, kind: input, shape index: {}]   ;;  %s1912_s8 = inlined_call_operand.vmem [shape: f32[1,128], index: 8, kind: input, shape index: {}]   ;;  %s1913_s9 = inlined_call_operand.hbm [shape: bf16[128,128], index: 9, kind: input, shape index: {}]   ;;  %s1914_s10 = inlined_call_operand.vmem [shape: f32[1,128], index: 10, kind: input, shape index: {}]   ;;  %s1915_s11 = inlined_call_operand.hbm [shape: bf16[128,128], index: 11, kind: input, shape index: {}]   ;;  %s1916_s12 = inlined_call_operand.vmem [shape: f32[1,128], index: 12, kind: input, shape index: {}]   ;;  %s1917_s13 = inlined_call_operand.hbm [shape: f32[8,128], index: 13, kind: output, shape index: {}]  }
   0x1   :  { %19 = vsyncpa [#allocation7], 0 }
   0x2   :  { %20 = vsyncpa [#allocation10], 0 }
   0x3   :  { %21 = vsyncpa [#allocation13], 0 }
   0x4   :  { %22 = vsyncpa [#allocation5], 0  ;;  %s1640_s25 = smov [#allocation6]   ;;  %s1454_s29 = scalar_lea.hbm %s1905_s1, 4096 }
   0x5   :  { %s38_s26 = sshll.u32 %s1640_s25, 4  ;;  %p1455_p0 = scmp.ne.s32.totalorder %s1905_s1, %s1454_s29  ;;  %s39_s26 = int_to_ptr.vmem [resolvable:$true] %s38_s26 }
   0x6   :  { %p1458_p1 = scmp.lt.u32.totalorder %s1454_s29, %s1905_s1 }
   0x8   :  { %p1460_p2 = pnand %p1458_p1, %p1455_p0 }
   0xa   :  { %1463 = shalt.err (!%p1460_p2)
}
   0xb   :  { %s1464_s17 = scalar_lea.vmem %s39_s26, 4096  ;;  %p1469_p4 = scmp.lt.s32.totalorder %s39_s26, %s39_s26 }
   0xc   :  { %p1465_p3 = scmp.ne.s32.totalorder %s39_s26, %s1464_s17  ;;  %p1470_p5 = scmp.lt.s32.totalorder %s1464_s17, %s1464_s17 }
   0xe   :  { %p1471_p6 = por %p1470_p5, %p1469_p4 }
  0x10   :  { %p1472_p7 = pnand %p1471_p6, %p1465_p3 }
  0x12   :  { %1475 = shalt.err (!%p1472_p7)
}
  0x13   :  { %s1641_s18 = smov 64   ;;  %s1642_s19 = smov 4  }
  0x14   :  { %44 = dma.hbm_to_vmem [thread:$0]  %s1905_s1, 4096, %s39_s26, [#allocation7], %s1641_s18, %s1641_s18, %s1642_s19  }
  0x15   :  { %s1643_s22 = smov [#allocation9]   ;;  %s1644_s24 = smov [#allocation12]  }
  0x16   :  { %s66_s23 = sshll.u32 %s1643_s22, 4  ;;  %s94_s25 = sshll.u32 %s1644_s24, 4  ;;  %s67_s23 = int_to_ptr.vmem [resolvable:$true] %s66_s23  ;;  %s95_s25 = int_to_ptr.vmem [resolvable:$true] %s94_s25 }
  0x17   :  { %s1476_s29 = scalar_lea.hbm %s1909_s5, 1024 }
  0x18   :  { %p1477_p8 = scmp.ne.s32.totalorder %s1909_s5, %s1476_s29  ;;  %p1480_p9 = scmp.lt.u32.totalorder %s1476_s29, %s1909_s5 }
  0x1a   :  { %p1482_p10 = pnand %p1480_p9, %p1477_p8 }
  0x1c   :  { %1485 = shalt.err (!%p1482_p10)
}
  0x1d   :  { %s1486_s1 = scalar_lea.vmem %s67_s23, 1024  ;;  %p1491_p12 = scmp.lt.s32.totalorder %s67_s23, %s67_s23 }
  0x1e   :  { %p1487_p11 = scmp.ne.s32.totalorder %s67_s23, %s1486_s1  ;;  %p1492_p13 = scmp.lt.s32.totalorder %s1486_s1, %s1486_s1 }
  0x20   :  { %p1493_p0 = por %p1492_p13, %p1491_p12 }
  0x22   :  { %p1494_p1 = pnand %p1493_p0, %p1487_p11 }
  0x24   :  { %1497 = shalt.err (!%p1494_p1)
}
  0x25   :  { %72 = dma.hbm_to_vmem [thread:$0]  %s1909_s5, 1024, %s67_s23, [#allocation10], %s1641_s18, %s1641_s18, %s1642_s19  }
  0x26   :  { %s1498_s22 = scalar_lea.hbm %s1913_s9, 1024 }
  0x27   :  { %p1499_p2 = scmp.ne.s32.totalorder %s1913_s9, %s1498_s22  ;;  %p1502_p3 = scmp.lt.u32.totalorder %s1498_s22, %s1913_s9 }
  0x29   :  { %p1504_p4 = pnand %p1502_p3, %p1499_p2 }
  0x2b   :  { %1507 = shalt.err (!%p1504_p4)
}
  0x2c   :  { %s1508_s30 = scalar_lea.vmem %s95_s25, 1024  ;;  %p1513_p6 = scmp.lt.s32.totalorder %s95_s25, %s95_s25 }
  0x2d   :  { %p1509_p5 = scmp.ne.s32.totalorder %s95_s25, %s1508_s30  ;;  %p1514_p7 = scmp.lt.s32.totalorder %s1508_s30, %s1508_s30 }
  0x2f   :  { %p1515_p8 = por %p1514_p7, %p1513_p6 }
  0x31   :  { %p1516_p9 = pnand %p1515_p8, %p1509_p5 }
  0x33   :  { %1519 = shalt.err (!%p1516_p9)
}
  0x34   :  { %100 = dma.hbm_to_vmem [thread:$0]  %s1913_s9, 1024, %s95_s25, [#allocation13], %s1641_s18, %s1641_s18, %s1642_s19  }
  0x35   :  { %s1645_s14 = smov [#allocation3]   ;;  %s1646_s16 = smov [#allocation8]  }
  0x36   :  { %s29_s15 = sshll.u32 %s1645_s14, 4  ;;  %s52_s1 = sshll.u32 %s1646_s16, 4  ;;  %s30_s15 = int_to_ptr.vmem [resolvable:$true] %s29_s15  ;;  %s53_s1 = int_to_ptr.vmem [resolvable:$true] %s52_s1 }
  0x37   :  { %s1520_s20 = scalar_lea.hbm %s1904_s0, 256 }
  0x38   :  { %p1521_p10 = scmp.ne.s32.totalorder %s1904_s0, %s1520_s20  ;;  %p1524_p11 = scmp.lt.u32.totalorder %s1520_s20, %s1904_s0 }
  0x3a   :  { %p1526_p12 = pnand %p1524_p11, %p1521_p10 }
  0x3c   :  { %1529 = shalt.err (!%p1526_p12)
}
  0x3d   :  { %s1530_s9 = scalar_lea.vmem %s30_s15, 256  ;;  %p1535_p0 = scmp.lt.s32.totalorder %s30_s15, %s30_s15 }
  0x3e   :  { %p1531_p13 = scmp.ne.s32.totalorder %s30_s15, %s1530_s9  ;;  %p1536_p1 = scmp.lt.s32.totalorder %s1530_s9, %s1530_s9 }
  0x40   :  { %p1537_p2 = por %p1536_p1, %p1535_p0 }
  0x42   :  { %p1538_p3 = pnand %p1537_p2, %p1531_p13 }
  0x44   :  { %1541 = shalt.err (!%p1538_p3)
}
  0x45   :  { %32 = dma.hbm_to_vmem [thread:$0]  %s1904_s0, 256, %s30_s15, [#allocation4]  }
  0x46   :  { %s1542_s5 = scalar_lea.hbm %s1907_s3, 1024 }
  0x47   :  { %p1543_p4 = scmp.ne.s32.totalorder %s1907_s3, %s1542_s5  ;;  %p1546_p5 = scmp.lt.u32.totalorder %s1542_s5, %s1907_s3 }
  0x49   :  { %p1548_p6 = pnand %p1546_p5, %p1543_p4 }
  0x4b   :  { %1551 = shalt.err (!%p1548_p6)
}
  0x4c   :  { %s1552_s17 = scalar_lea.vmem %s53_s1, 1024  ;;  %p1557_p8 = scmp.lt.s32.totalorder %s53_s1, %s53_s1 }
  0x4d   :  { %p1553_p7 = scmp.ne.s32.totalorder %s53_s1, %s1552_s17  ;;  %p1558_p9 = scmp.lt.s32.totalorder %s1552_s17, %s1552_s17 }
  0x4f   :  { %p1559_p10 = por %p1558_p9, %p1557_p8 }
  0x51   :  { %p1560_p11 = pnand %p1559_p10, %p1553_p7 }
  0x53   :  { %1563 = shalt.err (!%p1560_p11)
}
  0x54   :  { %58 = dma.hbm_to_vmem [thread:$0]  %s1907_s3, 1024, %s53_s1, [#allocation7], %s1641_s18, %s1641_s18, %s1642_s19  }
  0x55   :  { %s1647_s20 = smov [#allocation11]   ;;  %s1648_s22 = smov [#allocation14]  }
  0x56   :  { %s80_s21 = sshll.u32 %s1647_s20, 4  ;;  %s108_s24 = sshll.u32 %s1648_s22, 4  ;;  %s81_s21 = int_to_ptr.vmem [resolvable:$true] %s80_s21  ;;  %s109_s24 = int_to_ptr.vmem [resolvable:$true] %s108_s24 }
  0x57   :  { %s1564_s25 = scalar_lea.hbm %s1911_s7, 1024 }
  0x58   :  { %p1565_p12 = scmp.ne.s32.totalorder %s1911_s7, %s1564_s25  ;;  %p1568_p13 = scmp.lt.u32.totalorder %s1564_s25, %s1911_s7 }
  0x5a   :  { %p1570_p0 = pnand %p1568_p13, %p1565_p12 }
  0x5c   :  { %1573 = shalt.err (!%p1570_p0)
}
  0x5d   :  { %s1574_s3 = scalar_lea.vmem %s81_s21, 1024  ;;  %p1579_p2 = scmp.lt.s32.totalorder %s81_s21, %s81_s21 }
  0x5e   :  { %p1575_p1 = scmp.ne.s32.totalorder %s81_s21, %s1574_s3  ;;  %p1580_p3 = scmp.lt.s32.totalorder %s1574_s3, %s1574_s3 }
  0x60   :  { %p1581_p4 = por %p1580_p3, %p1579_p2 }
  0x62   :  { %p1582_p5 = pnand %p1581_p4, %p1575_p1 }
  0x64   :  { %1585 = shalt.err (!%p1582_p5)
}
  0x65   :  { %86 = dma.hbm_to_vmem [thread:$0]  %s1911_s7, 1024, %s81_s21, [#allocation10], %s1641_s18, %s1641_s18, %s1642_s19  }
  0x66   :  { %s1586_s26 = scalar_lea.hbm %s1915_s11, 1024 }
  0x67   :  { %p1587_p6 = scmp.ne.s32.totalorder %s1915_s11, %s1586_s26  ;;  %p1590_p7 = scmp.lt.u32.totalorder %s1586_s26, %s1915_s11 }
  0x69   :  { %p1592_p8 = pnand %p1590_p7, %p1587_p6 }
  0x6b   :  { %1595 = shalt.err (!%p1592_p8)
}
  0x6c   :  { %s1596_s22 = scalar_lea.vmem %s109_s24, 1024  ;;  %p1601_p10 = scmp.lt.s32.totalorder %s109_s24, %s109_s24 }
  0x6d   :  { %p1597_p9 = scmp.ne.s32.totalorder %s109_s24, %s1596_s22  ;;  %p1602_p11 = scmp.lt.s32.totalorder %s1596_s22, %s1596_s22 }
  0x6f   :  { %p1603_p12 = por %p1602_p11, %p1601_p10 }
  0x71   :  { %p1604_p13 = pnand %p1603_p12, %p1597_p9 }
  0x73   :  { %1607 = shalt.err (!%p1604_p13)
}
  0x74   :  { %114 = dma.hbm_to_vmem [thread:$0]  %s1915_s11, 1024, %s109_s24, [#allocation13], %s1641_s18, %s1641_s18, %s1642_s19  }
  0x75   :  { %1630 = dma.done.wait [#allocation4], 256  }
  0x76   :  { %1631 = vsyncadd [#allocation4], 4294967040 }
  0x77   :  { %1632 = dma.done.wait [#allocation7], 5120  }
  0x78   :  { %1633 = vsyncadd [#allocation7], 4294962176 }
  0x79   :  { %1634 = dma.done.wait [#allocation10], 2048  }
  0x7a   :  { %1635 = vsyncadd [#allocation10], 4294965248 }
  0x7b   :  { %1636 = dma.done.wait [#allocation13], 2048  }
  0x7c   :  { %1637 = vsyncadd [#allocation13], 4294965248  ;;  %v1378_v0 = vld [vmem:[#allocation6 + $0x40] sm:$0xff]   ;;  %v1382_v4 = vld [vmem:[#allocation6 + $0x48] sm:$0xff]   ;;  %v1649_v39 = vmov 0.0   ;;  %vm1650_vm0 = vmmov 0  }
  0x7d   :  { %v1379_v1 = vld [vmem:[#allocation6 + $0xc0] sm:$0xff]   ;;  %1177 = vmatprep.subr.bf16.mxu0 %v1378_v0  ;;  %v1383_v5 = vld [vmem:[#allocation6 + $0xc8] sm:$0xff]   ;;  %v1386_v8 = vld [vmem:[#allocation6 + $0x50] sm:$0xff]   ;;  %s1651_s29 = smov [#allocation15]  }
  0x7e   :  { %v1380_v2 = vld [vmem:[#allocation6] sm:$0xff]   ;;  %1199 = vmatprep.subr.bf16.mxu1 %v1379_v1  ;;  %v1384_v6 = vld [vmem:[#allocation6 + $0x8] sm:$0xff]   ;;  %v1387_v9 = vld [vmem:[#allocation6 + $0xd0] sm:$0xff]   ;;  %s1083_s30 = sshll.u32 %s1651_s29, 4  ;;  %s1084_s30 = int_to_ptr.vmem [resolvable:$true] %s1083_s30 }
  0x7f   :  { %v1381_v3 = vld [vmem:[#allocation6 + $0x80] sm:$0xff]   ;;  %1178 = vmatpush3.bf16.msra.mxu0 %v1380_v2  ;;  %v1385_v7 = vld [vmem:[#allocation6 + $0x88] sm:$0xff]   ;;  %v1388_v10 = vld [vmem:[#allocation6 + $0x10] sm:$0xff]   ;;  %p1613_p1 = scmp.lt.s32.totalorder %s1084_s30, %s1084_s30 }
  0x80   :  { %1200 = vmatpush3.bf16.msra.mxu1 %v1381_v3  ;;  %1179 = vmatprep.subr.bf16.mxu0 %v1382_v4  ;;  %v1389_v11 = vld [vmem:[#allocation6 + $0x90] sm:$0xff]   ;;  %v1390_v12 = vld [vmem:[#allocation6 + $0x58] sm:$0xff]   ;;  %v1394_v16 = vld [vmem:[#allocation6 + $0x60] sm:$0xff]  }
  0x81   :  { %1201 = vmatprep.subr.bf16.mxu1 %v1383_v5  ;;  %v1391_v13 = vld [vmem:[#allocation6 + $0xd8] sm:$0xff]   ;;  %v1395_v17 = vld [vmem:[#allocation6 + $0xe0] sm:$0xff]   ;;  %v1398_v20 = vld [vmem:[#allocation6 + $0x68] sm:$0xff]  }
  0x82   :  { %v1392_v14 = vld [vmem:[#allocation6 + $0x18] sm:$0xff]   ;;  %v1396_v18 = vld [vmem:[#allocation6 + $0x20] sm:$0xff]   ;;  %v1399_v21 = vld [vmem:[#allocation6 + $0xe8] sm:$0xff]  }
  0x83   :  { %1180 = vmatpush3.bf16.msra.mxu0 %v1384_v6  ;;  %v1393_v15 = vld [vmem:[#allocation6 + $0x98] sm:$0xff]   ;;  %v1397_v19 = vld [vmem:[#allocation6 + $0xa0] sm:$0xff]   ;;  %v1400_v22 = vld [vmem:[#allocation6 + $0x28] sm:$0xff]  }
  0x84   :  { %1202 = vmatpush3.bf16.msra.mxu1 %v1385_v7  ;;  %1181 = vmatprep.subr.bf16.mxu0 %v1386_v8  ;;  %v1401_v23 = vld [vmem:[#allocation6 + $0xa8] sm:$0xff]   ;;  %v1402_v24 = vld [vmem:[#allocation6 + $0x70] sm:$0xff]   ;;  %v1406_v28 = vld [vmem:[#allocation6 + $0x78] sm:$0xff]  }
  0x85   :  { %1203 = vmatprep.subr.bf16.mxu1 %v1387_v9  ;;  %v1403_v25 = vld [vmem:[#allocation6 + $0xf0] sm:$0xff]   ;;  %v1407_v29 = vld [vmem:[#allocation6 + $0xf8] sm:$0xff]   ;;  %v1414_v38 = vld [vmem:[#allocation8] sm:$0xff]  }
  0x86   :  { %v1404_v26 = vld [vmem:[#allocation6 + $0x30] sm:$0xff]   ;;  %v1408_v30 = vld [vmem:[#allocation6 + $0x38] sm:$0xff]   ;;  %v1415_v40 = vld [vmem:[#allocation8 + $0x8] sm:$0xff]  }
  0x87   :  { %1182 = vmatpush3.bf16.msra.mxu0 %v1388_v10  ;;  %v1405_v27 = vld [vmem:[#allocation6 + $0xb0] sm:$0xff]   ;;  %v1409_v31 = vld [vmem:[#allocation6 + $0xb8] sm:$0xff]   ;;  %v1418_v43 = vld [vmem:[#allocation8 + $0x20] sm:$0xff]  }
  0x88   :  { %1204 = vmatpush3.bf16.msra.mxu1 %v1389_v11  ;;  %1183 = vmatprep.subr.bf16.mxu0 %v1390_v12  ;;  %v145_v32 = vld [vmem:[#allocation3] sm:$0xff]  ;;  %v146_v33 = vld [vmem:[#allocation3 + $0x8] sm:$0xff]  ;;  %v1419_v44 = vld [vmem:[#allocation8 + $0x28] sm:$0xff]  }
  0x89   :  { %1205 = vmatprep.subr.bf16.mxu1 %v1391_v13  ;;  %v1095_v34 = vcombine.low %v145_v32, %v145_v32  ;;  %v1096_v35 = vcombine.high %v145_v32, %v145_v32  ;;  %v1097_v36 = vcombine.low %v146_v33, %v146_v33  ;;  %v1098_v37 = vcombine.high %v146_v33, %v146_v33  ;;  %v1416_v41 = vld [vmem:[#allocation8 + $0x10] sm:$0xff]   ;;  %v1417_v42 = vld [vmem:[#allocation8 + $0x18] sm:$0xff]   ;;  %v1422_v47 = vld [vmem:[#allocation9] sm:$0xff]  }
  0x8a   :  { %v1420_v45 = vld [vmem:[#allocation8 + $0x30] sm:$0xff]   ;;  %v1421_v46 = vld [vmem:[#allocation8 + $0x38] sm:$0xff]   ;;  %v1423_v48 = vld [vmem:[#allocation9 + $0x8] sm:$0xff]  }
  0x8b   :  { %1184 = vmatpush3.bf16.msra.mxu0 %v1392_v14  ;;  %449 = vmatprep.mubr.bf16.mxu0 %v1096_v35  ;;  %v1424_v49 = vld [vmem:[#allocation9 + $0x10] sm:$0xff]   ;;  %v1425_v50 = vld [vmem:[#allocation9 + $0x18] sm:$0xff]   ;;  %v1426_v51 = vld [vmem:[#allocation9 + $0x20] sm:$0xff]  }
  0x8c   :  { %1206 = vmatpush3.bf16.msra.mxu1 %v1393_v15  ;;  %1185 = vmatprep.subr.bf16.mxu0 %v1394_v16  ;;  %v1427_v52 = vld [vmem:[#allocation9 + $0x28] sm:$0xff]   ;;  %v1131_v61 = vld [vmem:[%s1906_s2] ss:$0 sm:$0xff]  ;;  %v1429_v5 = vld [vmem:[#allocation9 + $0x38] sm:$0xff]  }
  0x8d   :  { %1207 = vmatprep.subr.bf16.mxu1 %v1395_v17  ;;  %489 = vmatprep.mubr.bf16.mxu1 %v1098_v37  ;;  %v1428_v4 = vld [vmem:[#allocation9 + $0x30] sm:$0xff]   ;;  %v1430_v6 = vld [vmem:[#allocation11] sm:$0xff]   ;;  %v1431_v7 = vld [vmem:[#allocation11 + $0x8] sm:$0xff]  }
  0x8e   :  { %v1432_v8 = vld [vmem:[#allocation11 + $0x10] sm:$0xff]   ;;  %v1433_v9 = vld [vmem:[#allocation11 + $0x18] sm:$0xff]   ;;  %v1434_v10 = vld [vmem:[#allocation11 + $0x20] sm:$0xff]  }
  0x8f   :  { %1186 = vmatpush3.bf16.msra.mxu0 %v1396_v18  ;;  %v1435_v11 = vld [vmem:[#allocation11 + $0x28] sm:$0xff]   ;;  %v1132_v12 = vld [vmem:[%s1908_s4] ss:$0 sm:$0xff]  ;;  %v1445_v37 = vld [vmem:[#allocation12 + $0x38] sm:$0xff]  }
  0x90   :  { %1208 = vmatpush3.bf16.msra.mxu1 %v1397_v19  ;;  %1187 = vmatprep.subr.bf16.mxu0 %v1398_v20  ;;  %v1436_v20 = vld [vmem:[#allocation11 + $0x30] sm:$0xff]  }
  0x91   :  { %1209 = vmatprep.subr.bf16.mxu1 %v1399_v21  ;;  %v1437_v21 = vld [vmem:[#allocation11 + $0x38] sm:$0xff]  }
  0x93   :  { %1188 = vmatpush3.bf16.msra.mxu0 %v1400_v22  ;;  %v1438_v22 = vld [vmem:[#allocation12] sm:$0xff]  }
  0x94   :  { %1210 = vmatpush3.bf16.msra.mxu1 %v1401_v23  ;;  %1189 = vmatprep.subr.bf16.mxu0 %v1402_v24  ;;  %v1439_v23 = vld [vmem:[#allocation12 + $0x8] sm:$0xff]   ;;  %v1440_v24 = vld [vmem:[#allocation12 + $0x10] sm:$0xff]  }
  0x95   :  { %1211 = vmatprep.subr.bf16.mxu1 %v1403_v25  ;;  %v1441_v25 = vld [vmem:[#allocation12 + $0x18] sm:$0xff]  }
  0x97   :  { %1190 = vmatpush3.bf16.msra.mxu0 %v1404_v26  ;;  %v1442_v26 = vld [vmem:[#allocation12 + $0x20] sm:$0xff]  }
  0x98   :  { %1212 = vmatpush3.bf16.msra.mxu1 %v1405_v27  ;;  %1191 = vmatprep.subr.bf16.mxu0 %v1406_v28  ;;  %v1443_v27 = vld [vmem:[#allocation12 + $0x28] sm:$0xff]   ;;  %v1141_v28 = vld [vmem:[%s1910_s6] ss:$0 sm:$0xff] }
  0x99   :  { %1213 = vmatprep.subr.bf16.mxu1 %v1407_v29 }
  0x9b   :  { %1192 = vmatpush3.bf16.msra.mxu0 %v1408_v30 }
  0x9c   :  { %1214 = vmatpush3.bf16.msra.mxu1 %v1409_v31  ;;  %1266 = vmatprep.subr.bf16.mxu0 %v1649_v39 }
  0x9d   :  { %1286 = vmatprep.subr.bf16.mxu1 %v1649_v39 }
  0x9e   :  { %450 = vmatmul.mubr.bf16.vlgmr.msra.gmra.mrb[0].mxu0 %v1095_v34 }
  0x9f   :  { %490 = vmatmul.mubr.bf16.vlgmr.msra.gmra.mrb[0].mxu1 %v1097_v36  ;;  %1267 = vmatpush3.bf16.msra.mxu0 %v1414_v38  ;;  %v1444_v36 = vld [vmem:[#allocation12 + $0x30] sm:$0xff]   ;;  %v1446_v38 = vld [vmem:[#allocation14] sm:$0xff]  }
  0xa0   :  { %1268 = vmatprep.subr.bf16.mxu0 %v1649_v39  ;;  %1282 = vmatprep.mubr.msk.bf16.mxu0 %vm1650_vm0, %v1649_v39 }
  0xa1   :  { %1302 = vmatprep.mubr.msk.bf16.mxu1 %vm1650_vm0, %v1649_v39  ;;  %1287 = vmatpush3.bf16.msra.mxu1 %v1422_v47 }
  0xa2   :  { %1288 = vmatprep.subr.bf16.mxu1 %v1649_v39 }
  0xa3   :  { %1269 = vmatpush3.bf16.msra.mxu0 %v1415_v40  ;;  %v1447_v40 = vld [vmem:[#allocation14 + $0x8] sm:$0xff]  }
  0xa4   :  { %1270 = vmatprep.subr.bf16.mxu0 %v1649_v39 }
  0xa5   :  { %1289 = vmatpush3.bf16.msra.mxu1 %v1423_v48 }
  0xa6   :  { %1290 = vmatprep.subr.bf16.mxu1 %v1649_v39 }
  0xa7   :  { %1271 = vmatpush3.bf16.msra.mxu0 %v1416_v41  ;;  %v1448_v41 = vld [vmem:[#allocation14 + $0x10] sm:$0xff]  }
  0xa8   :  { %1272 = vmatprep.subr.bf16.mxu0 %v1649_v39 }
  0xa9   :  { %1291 = vmatpush3.bf16.msra.mxu1 %v1424_v49 }
  0xaa   :  { %1292 = vmatprep.subr.bf16.mxu1 %v1649_v39 }
  0xab   :  { %1273 = vmatpush3.bf16.msra.mxu0 %v1417_v42  ;;  %v1449_v42 = vld [vmem:[#allocation14 + $0x18] sm:$0xff]  }
  0xac   :  { %1274 = vmatprep.subr.bf16.mxu0 %v1649_v39 }
  0xad   :  { %1293 = vmatpush3.bf16.msra.mxu1 %v1425_v50 }
  0xae   :  { %1294 = vmatprep.subr.bf16.mxu1 %v1649_v39 }
  0xaf   :  { %1275 = vmatpush3.bf16.msra.mxu0 %v1418_v43  ;;  %v1450_v43 = vld [vmem:[#allocation14 + $0x20] sm:$0xff]  }
  0xb0   :  { %1276 = vmatprep.subr.bf16.mxu0 %v1649_v39 }
  0xb1   :  { %1295 = vmatpush3.bf16.msra.mxu1 %v1426_v51 }
  0xb2   :  { %1296 = vmatprep.subr.bf16.mxu1 %v1649_v39 }
  0xb3   :  { %1277 = vmatpush3.bf16.msra.mxu0 %v1419_v44  ;;  %v1451_v44 = vld [vmem:[#allocation14 + $0x28] sm:$0xff]  }
  0xb4   :  { %1278 = vmatprep.subr.bf16.mxu0 %v1649_v39 }
  0xb5   :  { %1297 = vmatpush3.bf16.msra.mxu1 %v1427_v52 }
  0xb6   :  { %1298 = vmatprep.subr.bf16.mxu1 %v1649_v39 }
  0xb7   :  { %1279 = vmatpush3.bf16.msra.mxu0 %v1420_v45  ;;  %v1150_v45 = vld [vmem:[%s1912_s8] ss:$0 sm:$0xff] }
  0xb8   :  { %1280 = vmatprep.subr.bf16.mxu0 %v1649_v39 }
  0xb9   :  { %1299 = vmatpush3.bf16.msra.mxu1 %v1428_v4 }
  0xba   :  { %1300 = vmatprep.subr.bf16.mxu1 %v1649_v39 }
  0xbb   :  { %1281 = vmatpush3.bf16.msra.mxu0 %v1421_v46 }
  0xbc   :  { %1306 = vmatprep.subr.bf16.mxu0 %v1649_v39 }
  0xbd   :  { %1301 = vmatpush3.bf16.msra.mxu1 %v1429_v5 }
  0xbe   :  { %1326 = vmatprep.subr.bf16.mxu1 %v1649_v39 }
 0x171   :  { %v1193_v53 = vpop.f32.mrb[0].mxu0 }
 0x172   :  { %v1215_v54 = vpop.f32.mrb[0].mxu1  ;;  %v1194_v55 = vpop.f32.mrb[1].mxu0 }
 0x173   :  { %v1216_v56 = vpop.f32.mrb[1].mxu1  ;;  %v1195_v57 = vadd.f32 %v1194_v55, %v1193_v53  ;;  %v1196_v59 = vpop.f32.mrb[2].mxu0  ;;  %v1452_v53 = vld [vmem:[#allocation14 + $0x30] sm:$0xff]  }
 0x174   :  { %v1217_v58 = vadd.f32 %v1216_v56, %v1215_v54  ;;  %v1218_v60 = vpop.f32.mrb[2].mxu1  ;;  %v1197_v62 = vpop.f32.mrb[3].mxu0  ;;  %v1453_v54 = vld [vmem:[#allocation14 + $0x38] sm:$0xff]   ;;  %v1159_v55 = vld [vmem:[%s1914_s10] ss:$0 sm:$0xff]  ;;  %s1608_s10 = scalar_lea.vmem %s1084_s30, 128 }
 0x175   :  { %v1219_v63 = vpop.f32.mrb[3].mxu1  ;;  %p1609_p0 = scmp.ne.s32.totalorder %s1084_s30, %s1608_s10  ;;  %p1614_p2 = scmp.lt.s32.totalorder %s1608_s10, %s1608_s10 }
 0x176   :  { %v492_v0 = vadd.f32 %v1217_v58, %v1195_v57  ;;  %v1168_v63 = vld [vmem:[%s1916_s12] ss:$0 sm:$0xff] }
 0x177   :  { %p1615_p3 = por %p1614_p2, %p1613_p1 }
 0x178   :  { %v510_v1 = vadd.f32 %v1131_v61, %v492_v0 }
 0x179   :  { %p1616_p4 = pnand %p1615_p3, %p1609_p0 }
 0x17a   :  { %v511_v2 = vmax.f32 %v510_v1, 0.0 }
 0x17c   :  { %v512_v3 = vpack.c.bf16 %v511_v2, %v511_v2 }
 0x17e   :  { %1283 = vmatmul.mubr.bf16.vlgmr.msra.gmra.mrb[4].mxu0 %v512_v3 }
 0x17f   :  { %1322 = vmatprep.mubr.msk.bf16.mxu0 %vm1650_vm0, %v1649_v39  ;;  %1307 = vmatpush3.bf16.msra.mxu0 %v1430_v6 }
 0x180   :  { %1308 = vmatprep.subr.bf16.mxu0 %v1649_v39 }
 0x183   :  { %1309 = vmatpush3.bf16.msra.mxu0 %v1431_v7 }
 0x184   :  { %1310 = vmatprep.subr.bf16.mxu0 %v1649_v39 }
 0x187   :  { %1311 = vmatpush3.bf16.msra.mxu0 %v1432_v8 }
 0x188   :  { %1312 = vmatprep.subr.bf16.mxu0 %v1649_v39 }
 0x18b   :  { %1313 = vmatpush3.bf16.msra.mxu0 %v1433_v9 }
 0x18c   :  { %1314 = vmatprep.subr.bf16.mxu0 %v1649_v39 }
 0x18f   :  { %1315 = vmatpush3.bf16.msra.mxu0 %v1434_v10 }
 0x190   :  { %1316 = vmatprep.subr.bf16.mxu0 %v1649_v39 }
 0x193   :  { %1317 = vmatpush3.bf16.msra.mxu0 %v1435_v11 }
 0x194   :  { %1318 = vmatprep.subr.bf16.mxu0 %v1649_v39 }
 0x197   :  { %1319 = vmatpush3.bf16.msra.mxu0 %v1436_v20 }
 0x198   :  { %1320 = vmatprep.subr.bf16.mxu0 %v1649_v39 }
 0x19b   :  { %1321 = vmatpush3.bf16.msra.mxu0 %v1437_v21 }
 0x19c   :  { %1346 = vmatprep.subr.bf16.mxu0 %v1649_v39 }
 0x251   :  { %v618_v13 = vpop.f32.mrb[4].mxu0 }
 0x252   :  { %v619_v14 = vadd.f32 %v1132_v12, %v618_v13  ;;  %v1284_v15 = vpop.f32.mrb[5].mxu0 }
 0x253   :  { %v621_v16 = vpop.f32.mrb[6].mxu0 }
 0x254   :  { %v624_v17 = vmax.f32 %v619_v14, 0.0  ;;  %v1285_v18 = vpop.f32.mrb[7].mxu0 }
 0x256   :  { %v625_v19 = vpack.c.bf16 %v624_v17, %v624_v17 }
 0x258   :  { %1303 = vmatmul.mubr.bf16.vlgmr.msra.gmra.mrb[4].mxu1 %v625_v19 }
 0x259   :  { %1342 = vmatprep.mubr.msk.bf16.mxu1 %vm1650_vm0, %v1649_v39  ;;  %1327 = vmatpush3.bf16.msra.mxu1 %v1438_v22 }
 0x25a   :  { %1328 = vmatprep.subr.bf16.mxu1 %v1649_v39 }
 0x25d   :  { %1329 = vmatpush3.bf16.msra.mxu1 %v1439_v23 }
 0x25e   :  { %1330 = vmatprep.subr.bf16.mxu1 %v1649_v39 }
 0x261   :  { %1331 = vmatpush3.bf16.msra.mxu1 %v1440_v24 }
 0x262   :  { %1332 = vmatprep.subr.bf16.mxu1 %v1649_v39 }
 0x265   :  { %1333 = vmatpush3.bf16.msra.mxu1 %v1441_v25 }
 0x266   :  { %1334 = vmatprep.subr.bf16.mxu1 %v1649_v39 }
 0x269   :  { %1335 = vmatpush3.bf16.msra.mxu1 %v1442_v26 }
 0x26a   :  { %1336 = vmatprep.subr.bf16.mxu1 %v1649_v39 }
 0x26d   :  { %1337 = vmatpush3.bf16.msra.mxu1 %v1443_v27 }
 0x26e   :  { %1338 = vmatprep.subr.bf16.mxu1 %v1649_v39 }
 0x271   :  { %1339 = vmatpush3.bf16.msra.mxu1 %v1444_v36 }
 0x272   :  { %1340 = vmatprep.subr.bf16.mxu1 %v1649_v39 }
 0x275   :  { %1341 = vmatpush3.bf16.msra.mxu1 %v1445_v37 }
 0x32b   :  { %v731_v29 = vpop.f32.mrb[4].mxu1 }
 0x32c   :  { %v732_v30 = vadd.f32 %v1141_v28, %v731_v29  ;;  %v1304_v31 = vpop.f32.mrb[5].mxu1 }
 0x32d   :  { %v734_v32 = vpop.f32.mrb[6].mxu1 }
 0x32e   :  { %v737_v33 = vmax.f32 %v732_v30, 0.0  ;;  %v1305_v34 = vpop.f32.mrb[7].mxu1 }
 0x330   :  { %v738_v35 = vpack.c.bf16 %v737_v33, %v737_v33 }
 0x332   :  { %1323 = vmatmul.mubr.bf16.vlgmr.msra.gmra.mrb[8].mxu0 %v738_v35 }
 0x333   :  { %1362 = vmatprep.mubr.msk.bf16.mxu0 %vm1650_vm0, %v1649_v39  ;;  %1347 = vmatpush3.bf16.msra.mxu0 %v1446_v38 }
 0x334   :  { %1348 = vmatprep.subr.bf16.mxu0 %v1649_v39 }
 0x337   :  { %1349 = vmatpush3.bf16.msra.mxu0 %v1447_v40 }
 0x338   :  { %1350 = vmatprep.subr.bf16.mxu0 %v1649_v39 }
 0x33b   :  { %1351 = vmatpush3.bf16.msra.mxu0 %v1448_v41 }
 0x33c   :  { %1352 = vmatprep.subr.bf16.mxu0 %v1649_v39 }
 0x33f   :  { %1353 = vmatpush3.bf16.msra.mxu0 %v1449_v42 }
 0x340   :  { %1354 = vmatprep.subr.bf16.mxu0 %v1649_v39 }
 0x343   :  { %1355 = vmatpush3.bf16.msra.mxu0 %v1450_v43 }
 0x344   :  { %1356 = vmatprep.subr.bf16.mxu0 %v1649_v39 }
 0x347   :  { %1357 = vmatpush3.bf16.msra.mxu0 %v1451_v44 }
 0x348   :  { %1358 = vmatprep.subr.bf16.mxu0 %v1649_v39 }
 0x34b   :  { %1359 = vmatpush3.bf16.msra.mxu0 %v1452_v53 }
 0x34c   :  { %1360 = vmatprep.subr.bf16.mxu0 %v1649_v39 }
 0x34f   :  { %1361 = vmatpush3.bf16.msra.mxu0 %v1453_v54 }
 0x405   :  { %v844_v46 = vpop.f32.mrb[8].mxu0 }
 0x406   :  { %v845_v47 = vadd.f32 %v1150_v45, %v844_v46  ;;  %v1324_v48 = vpop.f32.mrb[9].mxu0 }
 0x407   :  { %v847_v49 = vpop.f32.mrb[10].mxu0 }
 0x408   :  { %v850_v50 = vmax.f32 %v845_v47, 0.0  ;;  %v1325_v51 = vpop.f32.mrb[11].mxu0 }
 0x40a   :  { %v851_v52 = vpack.c.bf16 %v850_v50, %v850_v50 }
 0x40c   :  { %1343 = vmatmul.mubr.bf16.vlgmr.msra.gmra.mrb[8].mxu1 %v851_v52 }
 0x4df   :  { %v957_v56 = vpop.f32.mrb[8].mxu1 }
 0x4e0   :  { %v958_v57 = vadd.f32 %v1159_v55, %v957_v56  ;;  %v1344_v58 = vpop.f32.mrb[9].mxu1 }
 0x4e1   :  { %v960_v59 = vpop.f32.mrb[10].mxu1 }
 0x4e2   :  { %v963_v60 = vmax.f32 %v958_v57, 0.0  ;;  %v1345_v61 = vpop.f32.mrb[11].mxu1 }
 0x4e4   :  { %v964_v62 = vpack.c.bf16 %v963_v60, %v963_v60 }
 0x4e6   :  { %1363 = vmatmul.mubr.bf16.vlgmr.msra.gmra.mrb[12].mxu0 %v964_v62 }
 0x5b9   :  { %v1070_v39 = vpop.f32.mrb[12].mxu0 }
 0x5ba   :  { %v1071_v0 = vadd.f32 %v1168_v63, %v1070_v39  ;;  %v1364_v1 = vpop.f32.mrb[13].mxu0 }
 0x5bb   :  { %v1073_v2 = vpop.f32.mrb[14].mxu0 }
 0x5bc   :  { %1076 = vst [vmem:[#allocation15] sm:$0xff] %v1071_v0  ;;  %v1365_v3 = vpop.f32.mrb[15].mxu0 }
 0x5bd   :  { %1619 = shalt.err (!%p1616_p4)
}
 0x5be   :  { %s1620_s12 = scalar_lea.hbm %s1917_s13, 128 }
 0x5bf   :  { %p1621_p5 = scmp.ne.s32.totalorder %s1917_s13, %s1620_s12  ;;  %p1624_p6 = scmp.lt.u32.totalorder %s1620_s12, %s1917_s13 }
 0x5c1   :  { %p1626_p7 = pnand %p1624_p6, %p1621_p5 }
 0x5c3   :  { %1629 = shalt.err (!%p1626_p7)
}
 0x5c4   :  { %1086 = dma.vmem_to_hbm [thread:$0]  %s1084_s30, 128, %s1917_s13, [#allocation5]  }
 0x5c5   :  { %1638 = dma.done.wait [#allocation5], 128  }
 0x5c6   :  { %1639 = vsyncadd [#allocation5], 4294967168 }
 0x5c7   :  { %1090 = vsyncpa [#allocation4], 1 }
 0x5c8   :  { %1091 = vsyncpa [#allocation7], 1 }
 0x5c9   :  { %1092 = vsyncpa [#allocation10], 1 }
 0x5ca   :  { %1093 = vsyncpa [#allocation13], 1 }
 0x5cb   :  { %1094 = vsyncpa [#allocation5], 1 }

// kernel: tpu_custom_call.1
= control target key start
LH: loop header
LB: loop body
LE: loop exit
PB: predicated region body
PF: predicated region fallthrough
CT: control target
= control target key end

     0   :  { %18 = vsyncpa [#allocation4], 0  ;;  %s1904_s0 = inlined_call_operand.hbm [shape: bf16[8,512], index: 0, kind: input, shape index: {}]   ;;  %s1905_s1 = inlined_call_operand.hbm [shape: bf16[512,128], index: 1, kind: input, shape index: {}]   ;;  %s1906_s2 = inlined_call_operand.vmem [shape: f32[1,128], index: 2, kind: input, shape index: {}]   ;;  %s1907_s3 = inlined_call_operand.hbm [shape: bf16[128,128], index: 3, kind: input, shape index: {}]   ;;  %s1908_s4 = inlined_call_operand.vmem [shape: f32[1,128], index: 4, kind: input, shape index: {}]   ;;  %s1909_s5 = inlined_call_operand.hbm [shape: bf16[128,128], index: 5, kind: input, shape index: {}]   ;;  %s1910_s6 = inlined_call_operand.vmem [shape: f32[1,128], index: 6, kind: input, shape index: {}]   ;;  %s1911_s7 = inlined_call_operand.hbm [shape: bf16[128,128], index: 7, kind: input, shape index: {}]   ;;  %s1912_s8 = inlined_call_operand.vmem [shape: f32[1,128], index: 8, kind: input, shape index: {}]   ;;  %s1913_s9 = inlined_call_operand.hbm [shape: bf16[128,128], index: 9, kind: input, shape index: {}]   ;;  %s1914_s10 = inlined_call_operand.vmem [shape: f32[1,128], index: 10, kind: input, shape index: {}]   ;;  %s1915_s11 = inlined_call_operand.hbm [shape: bf16[128,128], index: 11, kind: input, shape index: {}]   ;;  %s1916_s12 = inlined_call_operand.vmem [shape: f32[1,128], index: 12, kind: input, shape index: {}]   ;;  %s1917_s13 = inlined_call_operand.hbm [shape: f32[8,128], index: 13, kind: output, shape index: {}]  }
   0x1   :  { %19 = vsyncpa [#allocation7], 0 }
   0x2   :  { %20 = vsyncpa [#allocation10], 0 }
   0x3   :  { %21 = vsyncpa [#allocation13], 0 }
   0x4   :  { %22 = vsyncpa [#allocation5], 0  ;;  %s1640_s25 = smov [#allocation6]   ;;  %s1454_s29 = scalar_lea.hbm %s1905_s1, 4096 }
   0x5   :  { %s38_s26 = sshll.u32 %s1640_s25, 4  ;;  %p1455_p0 = scmp.ne.s32.totalorder %s1905_s1, %s1454_s29  ;;  %s39_s26 = int_to_ptr.vmem [resolvable:$true] %s38_s26 }
   0x6   :  { %p1458_p1 = scmp.lt.u32.totalorder %s1454_s29, %s1905_s1 }
   0x8   :  { %p1460_p2 = pnand %p1458_p1, %p1455_p0 }
   0xa   :  { %1463 = shalt.err (!%p1460_p2)
}
   0xb   :  { %s1464_s17 = scalar_lea.vmem %s39_s26, 4096  ;;  %p1469_p4 = scmp.lt.s32.totalorder %s39_s26, %s39_s26 }
   0xc   :  { %p1465_p3 = scmp.ne.s32.totalorder %s39_s26, %s1464_s17  ;;  %p1470_p5 = scmp.lt.s32.totalorder %s1464_s17, %s1464_s17 }
   0xe   :  { %p1471_p6 = por %p1470_p5, %p1469_p4 }
  0x10   :  { %p1472_p7 = pnand %p1471_p6, %p1465_p3 }
  0x12   :  { %1475 = shalt.err (!%p1472_p7)
}
  0x13   :  { %s1641_s18 = smov 64   ;;  %s1642_s19 = smov 4  }
  0x14   :  { %44 = dma.hbm_to_vmem [thread:$0]  %s1905_s1, 4096, %s39_s26, [#allocation7], %s1641_s18, %s1641_s18, %s1642_s19  }
  0x15   :  { %s1643_s22 = smov [#allocation9]   ;;  %s1644_s24 = smov [#allocation12]  }
  0x16   :  { %s66_s23 = sshll.u32 %s1643_s22, 4  ;;  %s94_s25 = sshll.u32 %s1644_s24, 4  ;;  %s67_s23 = int_to_ptr.vmem [resolvable:$true] %s66_s23  ;;  %s95_s25 = int_to_ptr.vmem [resolvable:$true] %s94_s25 }
  0x17   :  { %s1476_s29 = scalar_lea.hbm %s1909_s5, 1024 }
  0x18   :  { %p1477_p8 = scmp.ne.s32.totalorder %s1909_s5, %s1476_s29  ;;  %p1480_p9 = scmp.lt.u32.totalorder %s1476_s29, %s1909_s5 }
  0x1a   :  { %p1482_p10 = pnand %p1480_p9, %p1477_p8 }
  0x1c   :  { %1485 = shalt.err (!%p1482_p10)
}
  0x1d   :  { %s1486_s1 = scalar_lea.vmem %s67_s23, 1024  ;;  %p1491_p12 = scmp.lt.s32.totalorder %s67_s23, %s67_s23 }
  0x1e   :  { %p1487_p11 = scmp.ne.s32.totalorder %s67_s23, %s1486_s1  ;;  %p1492_p13 = scmp.lt.s32.totalorder %s1486_s1, %s1486_s1 }
  0x20   :  { %p1493_p0 = por %p1492_p13, %p1491_p12 }
  0x22   :  { %p1494_p1 = pnand %p1493_p0, %p1487_p11 }
  0x24   :  { %1497 = shalt.err (!%p1494_p1)
}
  0x25   :  { %72 = dma.hbm_to_vmem [thread:$0]  %s1909_s5, 1024, %s67_s23, [#allocation10], %s1641_s18, %s1641_s18, %s1642_s19  }
  0x26   :  { %s1498_s22 = scalar_lea.hbm %s1913_s9, 1024 }
  0x27   :  { %p1499_p2 = scmp.ne.s32.totalorder %s1913_s9, %s1498_s22  ;;  %p1502_p3 = scmp.lt.u32.totalorder %s1498_s22, %s1913_s9 }
  0x29   :  { %p1504_p4 = pnand %p1502_p3, %p1499_p2 }
  0x2b   :  { %1507 = shalt.err (!%p1504_p4)
}
  0x2c   :  { %s1508_s30 = scalar_lea.vmem %s95_s25, 1024  ;;  %p1513_p6 = scmp.lt.s32.totalorder %s95_s25, %s95_s25 }
  0x2d   :  { %p1509_p5 = scmp.ne.s32.totalorder %s95_s25, %s1508_s30  ;;  %p1514_p7 = scmp.lt.s32.totalorder %s1508_s30, %s1508_s30 }
  0x2f   :  { %p1515_p8 = por %p1514_p7, %p1513_p6 }
  0x31   :  { %p1516_p9 = pnand %p1515_p8, %p1509_p5 }
  0x33   :  { %1519 = shalt.err (!%p1516_p9)
}
  0x34   :  { %100 = dma.hbm_to_vmem [thread:$0]  %s1913_s9, 1024, %s95_s25, [#allocation13], %s1641_s18, %s1641_s18, %s1642_s19  }
  0x35   :  { %s1645_s14 = smov [#allocation3]   ;;  %s1646_s16 = smov [#allocation8]  }
  0x36   :  { %s29_s15 = sshll.u32 %s1645_s14, 4  ;;  %s52_s1 = sshll.u32 %s1646_s16, 4  ;;  %s30_s15 = int_to_ptr.vmem [resolvable:$true] %s29_s15  ;;  %s53_s1 = int_to_ptr.vmem [resolvable:$true] %s52_s1 }
  0x37   :  { %s1520_s20 = scalar_lea.hbm %s1904_s0, 256 }
  0x38   :  { %p1521_p10 = scmp.ne.s32.totalorder %s1904_s0, %s1520_s20  ;;  %p1524_p11 = scmp.lt.u32.totalorder %s1520_s20, %s1904_s0 }
  0x3a   :  { %p1526_p12 = pnand %p1524_p11, %p1521_p10 }
  0x3c   :  { %1529 = shalt.err (!%p1526_p12)
}
  0x3d   :  { %s1530_s9 = scalar_lea.vmem %s30_s15, 256  ;;  %p1535_p0 = scmp.lt.s32.totalorder %s30_s15, %s30_s15 }
  0x3e   :  { %p1531_p13 = scmp.ne.s32.totalorder %s30_s15, %s1530_s9  ;;  %p1536_p1 = scmp.lt.s32.totalorder %s1530_s9, %s1530_s9 }
  0x40   :  { %p1537_p2 = por %p1536_p1, %p1535_p0 }
  0x42   :  { %p1538_p3 = pnand %p1537_p2, %p1531_p13 }
  0x44   :  { %1541 = shalt.err (!%p1538_p3)
}
  0x45   :  { %32 = dma.hbm_to_vmem [thread:$0]  %s1904_s0, 256, %s30_s15, [#allocation4]  }
  0x46   :  { %s1542_s5 = scalar_lea.hbm %s1907_s3, 1024 }
  0x47   :  { %p1543_p4 = scmp.ne.s32.totalorder %s1907_s3, %s1542_s5  ;;  %p1546_p5 = scmp.lt.u32.totalorder %s1542_s5, %s1907_s3 }
  0x49   :  { %p1548_p6 = pnand %p1546_p5, %p1543_p4 }
  0x4b   :  { %1551 = shalt.err (!%p1548_p6)
}
  0x4c   :  { %s1552_s17 = scalar_lea.vmem %s53_s1, 1024  ;;  %p1557_p8 = scmp.lt.s32.totalorder %s53_s1, %s53_s1 }
  0x4d   :  { %p1553_p7 = scmp.ne.s32.totalorder %s53_s1, %s1552_s17  ;;  %p1558_p9 = scmp.lt.s32.totalorder %s1552_s17, %s1552_s17 }
  0x4f   :  { %p1559_p10 = por %p1558_p9, %p1557_p8 }
  0x51   :  { %p1560_p11 = pnand %p1559_p10, %p1553_p7 }
  0x53   :  { %1563 = shalt.err (!%p1560_p11)
}
  0x54   :  { %58 = dma.hbm_to_vmem [thread:$0]  %s1907_s3, 1024, %s53_s1, [#allocation7], %s1641_s18, %s1641_s18, %s1642_s19  }
  0x55   :  { %s1647_s20 = smov [#allocation11]   ;;  %s1648_s22 = smov [#allocation14]  }
  0x56   :  { %s80_s21 = sshll.u32 %s1647_s20, 4  ;;  %s108_s24 = sshll.u32 %s1648_s22, 4  ;;  %s81_s21 = int_to_ptr.vmem [resolvable:$true] %s80_s21  ;;  %s109_s24 = int_to_ptr.vmem [resolvable:$true] %s108_s24 }
  0x57   :  { %s1564_s25 = scalar_lea.hbm %s1911_s7, 1024 }
  0x58   :  { %p1565_p12 = scmp.ne.s32.totalorder %s1911_s7, %s1564_s25  ;;  %p1568_p13 = scmp.lt.u32.totalorder %s1564_s25, %s1911_s7 }
  0x5a   :  { %p1570_p0 = pnand %p1568_p13, %p1565_p12 }
  0x5c   :  { %1573 = shalt.err (!%p1570_p0)
}
  0x5d   :  { %s1574_s3 = scalar_lea.vmem %s81_s21, 1024  ;;  %p1579_p2 = scmp.lt.s32.totalorder %s81_s21, %s81_s21 }
  0x5e   :  { %p1575_p1 = scmp.ne.s32.totalorder %s81_s21, %s1574_s3  ;;  %p1580_p3 = scmp.lt.s32.totalorder %s1574_s3, %s1574_s3 }
  0x60   :  { %p1581_p4 = por %p1580_p3, %p1579_p2 }
  0x62   :  { %p1582_p5 = pnand %p1581_p4, %p1575_p1 }
  0x64   :  { %1585 = shalt.err (!%p1582_p5)
}
  0x65   :  { %86 = dma.hbm_to_vmem [thread:$0]  %s1911_s7, 1024, %s81_s21, [#allocation10], %s1641_s18, %s1641_s18, %s1642_s19  }
  0x66   :  { %s1586_s26 = scalar_lea.hbm %s1915_s11, 1024 }
  0x67   :  { %p1587_p6 = scmp.ne.s32.totalorder %s1915_s11, %s1586_s26  ;;  %p1590_p7 = scmp.lt.u32.totalorder %s1586_s26, %s1915_s11 }
  0x69   :  { %p1592_p8 = pnand %p1590_p7, %p1587_p6 }
  0x6b   :  { %1595 = shalt.err (!%p1592_p8)
}
  0x6c   :  { %s1596_s22 = scalar_lea.vmem %s109_s24, 1024  ;;  %p1601_p10 = scmp.lt.s32.totalorder %s109_s24, %s109_s24 }
  0x6d   :  { %p1597_p9 = scmp.ne.s32.totalorder %s109_s24, %s1596_s22  ;;  %p1602_p11 = scmp.lt.s32.totalorder %s1596_s22, %s1596_s22 }
  0x6f   :  { %p1603_p12 = por %p1602_p11, %p1601_p10 }
  0x71   :  { %p1604_p13 = pnand %p1603_p12, %p1597_p9 }
  0x73   :  { %1607 = shalt.err (!%p1604_p13)
}
  0x74   :  { %114 = dma.hbm_to_vmem [thread:$0]  %s1915_s11, 1024, %s109_s24, [#allocation13], %s1641_s18, %s1641_s18, %s1642_s19  }
  0x75   :  { %1630 = dma.done.wait [#allocation4], 256  }
  0x76   :  { %1631 = vsyncadd [#allocation4], 4294967040 }
  0x77   :  { %1632 = dma.done.wait [#allocation7], 5120  }
  0x78   :  { %1633 = vsyncadd [#allocation7], 4294962176 }
  0x79   :  { %1634 = dma.done.wait [#allocation10], 2048  }
  0x7a   :  { %1635 = vsyncadd [#allocation10], 4294965248 }
  0x7b   :  { %1636 = dma.done.wait [#allocation13], 2048  }
  0x7c   :  { %1637 = vsyncadd [#allocation13], 4294965248  ;;  %v1378_v0 = vld [vmem:[#allocation6 + $0x40] sm:$0xff]   ;;  %v1382_v4 = vld [vmem:[#allocation6 + $0x48] sm:$0xff]   ;;  %v1649_v39 = vmov 0.0   ;;  %vm1650_vm0 = vmmov 0  }
  0x7d   :  { %v1379_v1 = vld [vmem:[#allocation6 + $0xc0] sm:$0xff]   ;;  %1177 = vmatprep.subr.bf16.mxu0 %v1378_v0  ;;  %v1383_v5 = vld [vmem:[#allocation6 + $0xc8] sm:$0xff]   ;;  %v1386_v8 = vld [vmem:[#allocation6 + $0x50] sm:$0xff]   ;;  %s1651_s29 = smov [#allocation15]  }
  0x7e   :  { %v1380_v2 = vld [vmem:[#allocation6] sm:$0xff]   ;;  %1199 = vmatprep.subr.bf16.mxu1 %v1379_v1  ;;  %v1384_v6 = vld [vmem:[#allocation6 + $0x8] sm:$0xff]   ;;  %v1387_v9 = vld [vmem:[#allocation6 + $0xd0] sm:$0xff]   ;;  %s1083_s30 = sshll.u32 %s1651_s29, 4  ;;  %s1084_s30 = int_to_ptr.vmem [resolvable:$true] %s1083_s30 }
  0x7f   :  { %v1381_v3 = vld [vmem:[#allocation6 + $0x80] sm:$0xff]   ;;  %1178 = vmatpush3.bf16.msra.mxu0 %v1380_v2  ;;  %v1385_v7 = vld [vmem:[#allocation6 + $0x88] sm:$0xff]   ;;  %v1388_v10 = vld [vmem:[#allocation6 + $0x10] sm:$0xff]   ;;  %p1613_p1 = scmp.lt.s32.totalorder %s1084_s30, %s1084_s30 }
  0x80   :  { %1200 = vmatpush3.bf16.msra.mxu1 %v1381_v3  ;;  %1179 = vmatprep.subr.bf16.mxu0 %v1382_v4  ;;  %v1389_v11 = vld [vmem:[#allocation6 + $0x90] sm:$0xff]   ;;  %v1390_v12 = vld [vmem:[#allocation6 + $0x58] sm:$0xff]   ;;  %v1394_v16 = vld [vmem:[#allocation6 + $0x60] sm:$0xff]  }
  0x81   :  { %1201 = vmatprep.subr.bf16.mxu1 %v1383_v5  ;;  %v1391_v13 = vld [vmem:[#allocation6 + $0xd8] sm:$0xff]   ;;  %v1395_v17 = vld [vmem:[#allocation6 + $0xe0] sm:$0xff]   ;;  %v1398_v20 = vld [vmem:[#allocation6 + $0x68] sm:$0xff]  }
  0x82   :  { %v1392_v14 = vld [vmem:[#allocation6 + $0x18] sm:$0xff]   ;;  %v1396_v18 = vld [vmem:[#allocation6 + $0x20] sm:$0xff]   ;;  %v1399_v21 = vld [vmem:[#allocation6 + $0xe8] sm:$0xff]  }
  0x83   :  { %1180 = vmatpush3.bf16.msra.mxu0 %v1384_v6  ;;  %v1393_v15 = vld [vmem:[#allocation6 + $0x98] sm:$0xff]   ;;  %v1397_v19 = vld [vmem:[#allocation6 + $0xa0] sm:$0xff]   ;;  %v1400_v22 = vld [vmem:[#allocation6 + $0x28] sm:$0xff]  }
  0x84   :  { %1202 = vmatpush3.bf16.msra.mxu1 %v1385_v7  ;;  %1181 = vmatprep.subr.bf16.mxu0 %v1386_v8  ;;  %v1401_v23 = vld [vmem:[#allocation6 + $0xa8] sm:$0xff]   ;;  %v1402_v24 = vld [vmem:[#allocation6 + $0x70] sm:$0xff]   ;;  %v1406_v28 = vld [vmem:[#allocation6 + $0x78] sm:$0xff]  }
  0x85   :  { %1203 = vmatprep.subr.bf16.mxu1 %v1387_v9  ;;  %v1403_v25 = vld [vmem:[#allocation6 + $0xf0] sm:$0xff]   ;;  %v1407_v29 = vld [vmem:[#allocation6 + $0xf8] sm:$0xff]   ;;  %v1414_v38 = vld [vmem:[#allocation8] sm:$0xff]  }
  0x86   :  { %v1404_v26 = vld [vmem:[#allocation6 + $0x30] sm:$0xff]   ;;  %v1408_v30 = vld [vmem:[#allocation6 + $0x38] sm:$0xff]   ;;  %v1415_v40 = vld [vmem:[#allocation8 + $0x8] sm:$0xff]  }
  0x87   :  { %1182 = vmatpush3.bf16.msra.mxu0 %v1388_v10  ;;  %v1405_v27 = vld [vmem:[#allocation6 + $0xb0] sm:$0xff]   ;;  %v1409_v31 = vld [vmem:[#allocation6 + $0xb8] sm:$0xff]   ;;  %v1418_v43 = vld [vmem:[#allocation8 + $0x20] sm:$0xff]  }
  0x88   :  { %1204 = vmatpush3.bf16.msra.mxu1 %v1389_v11  ;;  %1183 = vmatprep.subr.bf16.mxu0 %v1390_v12  ;;  %v145_v32 = vld [vmem:[#allocation3] sm:$0xff]  ;;  %v146_v33 = vld [vmem:[#allocation3 + $0x8] sm:$0xff]  ;;  %v1419_v44 = vld [vmem:[#allocation8 + $0x28] sm:$0xff]  }
  0x89   :  { %1205 = vmatprep.subr.bf16.mxu1 %v1391_v13  ;;  %v1095_v34 = vcombine.low %v145_v32, %v145_v32  ;;  %v1096_v35 = vcombine.high %v145_v32, %v145_v32  ;;  %v1097_v36 = vcombine.low %v146_v33, %v146_v33  ;;  %v1098_v37 = vcombine.high %v146_v33, %v146_v33  ;;  %v1416_v41 = vld [vmem:[#allocation8 + $0x10] sm:$0xff]   ;;  %v1417_v42 = vld [vmem:[#allocation8 + $0x18] sm:$0xff]   ;;  %v1422_v47 = vld [vmem:[#allocation9] sm:$0xff]  }
  0x8a   :  { %v1420_v45 = vld [vmem:[#allocation8 + $0x30] sm:$0xff]   ;;  %v1421_v46 = vld [vmem:[#allocation8 + $0x38] sm:$0xff]   ;;  %v1423_v48 = vld [vmem:[#allocation9 + $0x8] sm:$0xff]  }
  0x8b   :  { %1184 = vmatpush3.bf16.msra.mxu0 %v1392_v14  ;;  %449 = vmatprep.mubr.bf16.mxu0 %v1096_v35  ;;  %v1424_v49 = vld [vmem:[#allocation9 + $0x10] sm:$0xff]   ;;  %v1425_v50 = vld [vmem:[#allocation9 + $0x18] sm:$0xff]   ;;  %v1426_v51 = vld [vmem:[#allocation9 + $0x20] sm:$0xff]  }
  0x8c   :  { %1206 = vmatpush3.bf16.msra.mxu1 %v1393_v15  ;;  %1185 = vmatprep.subr.bf16.mxu0 %v1394_v16  ;;  %v1427_v52 = vld [vmem:[#allocation9 + $0x28] sm:$0xff]   ;;  %v1131_v61 = vld [vmem:[%s1906_s2] ss:$0 sm:$0xff]  ;;  %v1429_v5 = vld [vmem:[#allocation9 + $0x38] sm:$0xff]  }
  0x8d   :  { %1207 = vmatprep.subr.bf16.mxu1 %v1395_v17  ;;  %489 = vmatprep.mubr.bf16.mxu1 %v1098_v37  ;;  %v1428_v4 = vld [vmem:[#allocation9 + $0x30] sm:$0xff]   ;;  %v1430_v6 = vld [vmem:[#allocation11] sm:$0xff]   ;;  %v1431_v7 = vld [vmem:[#allocation11 + $0x8] sm:$0xff]  }
  0x8e   :  { %v1432_v8 = vld [vmem:[#allocation11 + $0x10] sm:$0xff]   ;;  %v1433_v9 = vld [vmem:[#allocation11 + $0x18] sm:$0xff]   ;;  %v1434_v10 = vld [vmem:[#allocation11 + $0x20] sm:$0xff]  }
  0x8f   :  { %1186 = vmatpush3.bf16.msra.mxu0 %v1396_v18  ;;  %v1435_v11 = vld [vmem:[#allocation11 + $0x28] sm:$0xff]   ;;  %v1132_v12 = vld [vmem:[%s1908_s4] ss:$0 sm:$0xff]  ;;  %v1445_v37 = vld [vmem:[#allocation12 + $0x38] sm:$0xff]  }
  0x90   :  { %1208 = vmatpush3.bf16.msra.mxu1 %v1397_v19  ;;  %1187 = vmatprep.subr.bf16.mxu0 %v1398_v20  ;;  %v1436_v20 = vld [vmem:[#allocation11 + $0x30] sm:$0xff]  }
  0x91   :  { %1209 = vmatprep.subr.bf16.mxu1 %v1399_v21  ;;  %v1437_v21 = vld [vmem:[#allocation11 + $0x38] sm:$0xff]  }
  0x93   :  { %1188 = vmatpush3.bf16.msra.mxu0 %v1400_v22  ;;  %v1438_v22 = vld [vmem:[#allocation12] sm:$0xff]  }
  0x94   :  { %1210 = vmatpush3.bf16.msra.mxu1 %v1401_v23  ;;  %1189 = vmatprep.subr.bf16.mxu0 %v1402_v24  ;;  %v1439_v23 = vld [vmem:[#allocation12 + $0x8] sm:$0xff]   ;;  %v1440_v24 = vld [vmem:[#allocation12 + $0x10] sm:$0xff]  }
  0x95   :  { %1211 = vmatprep.subr.bf16.mxu1 %v1403_v25  ;;  %v1441_v25 = vld [vmem:[#allocation12 + $0x18] sm:$0xff]  }
  0x97   :  { %1190 = vmatpush3.bf16.msra.mxu0 %v1404_v26  ;;  %v1442_v26 = vld [vmem:[#allocation12 + $0x20] sm:$0xff]  }
  0x98   :  { %1212 = vmatpush3.bf16.msra.mxu1 %v1405_v27  ;;  %1191 = vmatprep.subr.bf16.mxu0 %v1406_v28  ;;  %v1443_v27 = vld [vmem:[#allocation12 + $0x28] sm:$0xff]   ;;  %v1141_v28 = vld [vmem:[%s1910_s6] ss:$0 sm:$0xff] }
  0x99   :  { %1213 = vmatprep.subr.bf16.mxu1 %v1407_v29 }
  0x9b   :  { %1192 = vmatpush3.bf16.msra.mxu0 %v1408_v30 }
  0x9c   :  { %1214 = vmatpush3.bf16.msra.mxu1 %v1409_v31  ;;  %1266 = vmatprep.subr.bf16.mxu0 %v1649_v39 }
  0x9d   :  { %1286 = vmatprep.subr.bf16.mxu1 %v1649_v39 }
  0x9e   :  { %450 = vmatmul.mubr.bf16.vlgmr.msra.gmra.mrb[0].mxu0 %v1095_v34 }
  0x9f   :  { %490 = vmatmul.mubr.bf16.vlgmr.msra.gmra.mrb[0].mxu1 %v1097_v36  ;;  %1267 = vmatpush3.bf16.msra.mxu0 %v1414_v38  ;;  %v1444_v36 = vld [vmem:[#allocation12 + $0x30] sm:$0xff]   ;;  %v1446_v38 = vld [vmem:[#allocation14] sm:$0xff]  }
  0xa0   :  { %1268 = vmatprep.subr.bf16.mxu0 %v1649_v39  ;;  %1282 = vmatprep.mubr.msk.bf16.mxu0 %vm1650_vm0, %v1649_v39 }
  0xa1   :  { %1302 = vmatprep.mubr.msk.bf16.mxu1 %vm1650_vm0, %v1649_v39  ;;  %1287 = vmatpush3.bf16.msra.mxu1 %v1422_v47 }
  0xa2   :  { %1288 = vmatprep.subr.bf16.mxu1 %v1649_v39 }
  0xa3   :  { %1269 = vmatpush3.bf16.msra.mxu0 %v1415_v40  ;;  %v1447_v40 = vld [vmem:[#allocation14 + $0x8] sm:$0xff]  }
  0xa4   :  { %1270 = vmatprep.subr.bf16.mxu0 %v1649_v39 }
  0xa5   :  { %1289 = vmatpush3.bf16.msra.mxu1 %v1423_v48 }
  0xa6   :  { %1290 = vmatprep.subr.bf16.mxu1 %v1649_v39 }
  0xa7   :  { %1271 = vmatpush3.bf16.msra.mxu0 %v1416_v41  ;;  %v1448_v41 = vld [vmem:[#allocation14 + $0x10] sm:$0xff]  }
  0xa8   :  { %1272 = vmatprep.subr.bf16.mxu0 %v1649_v39 }
  0xa9   :  { %1291 = vmatpush3.bf16.msra.mxu1 %v1424_v49 }
  0xaa   :  { %1292 = vmatprep.subr.bf16.mxu1 %v1649_v39 }
  0xab   :  { %1273 = vmatpush3.bf16.msra.mxu0 %v1417_v42  ;;  %v1449_v42 = vld [vmem:[#allocation14 + $0x18] sm:$0xff]  }
  0xac   :  { %1274 = vmatprep.subr.bf16.mxu0 %v1649_v39 }
  0xad   :  { %1293 = vmatpush3.bf16.msra.mxu1 %v1425_v50 }
  0xae   :  { %1294 = vmatprep.subr.bf16.mxu1 %v1649_v39 }
  0xaf   :  { %1275 = vmatpush3.bf16.msra.mxu0 %v1418_v43  ;;  %v1450_v43 = vld [vmem:[#allocation14 + $0x20] sm:$0xff]  }
  0xb0   :  { %1276 = vmatprep.subr.bf16.mxu0 %v1649_v39 }
  0xb1   :  { %1295 = vmatpush3.bf16.msra.mxu1 %v1426_v51 }
  0xb2   :  { %1296 = vmatprep.subr.bf16.mxu1 %v1649_v39 }
  0xb3   :  { %1277 = vmatpush3.bf16.msra.mxu0 %v1419_v44  ;;  %v1451_v44 = vld [vmem:[#allocation14 + $0x28] sm:$0xff]  }
  0xb4   :  { %1278 = vmatprep.subr.bf16.mxu0 %v1649_v39 }
  0xb5   :  { %1297 = vmatpush3.bf16.msra.mxu1 %v1427_v52 }
  0xb6   :  { %1298 = vmatprep.subr.bf16.mxu1 %v1649_v39 }
  0xb7   :  { %1279 = vmatpush3.bf16.msra.mxu0 %v1420_v45  ;;  %v1150_v45 = vld [vmem:[%s1912_s8] ss:$0 sm:$0xff] }
  0xb8   :  { %1280 = vmatprep.subr.bf16.mxu0 %v1649_v39 }
  0xb9   :  { %1299 = vmatpush3.bf16.msra.mxu1 %v1428_v4 }
  0xba   :  { %1300 = vmatprep.subr.bf16.mxu1 %v1649_v39 }
  0xbb   :  { %1281 = vmatpush3.bf16.msra.mxu0 %v1421_v46 }
  0xbc   :  { %1306 = vmatprep.subr.bf16.mxu0 %v1649_v39 }
  0xbd   :  { %1301 = vmatpush3.bf16.msra.mxu1 %v1429_v5 }
  0xbe   :  { %1326 = vmatprep.subr.bf16.mxu1 %v1649_v39 }
 0x171   :  { %v1193_v53 = vpop.f32.mrb[0].mxu0 }
 0x172   :  { %v1215_v54 = vpop.f32.mrb[0].mxu1  ;;  %v1194_v55 = vpop.f32.mrb[1].mxu0 }
 0x173   :  { %v1216_v56 = vpop.f32.mrb[1].mxu1  ;;  %v1195_v57 = vadd.f32 %v1194_v55, %v1193_v53  ;;  %v1196_v59 = vpop.f32.mrb[2].mxu0  ;;  %v1452_v53 = vld [vmem:[#allocation14 + $0x30] sm:$0xff]  }
 0x174   :  { %v1217_v58 = vadd.f32 %v1216_v56, %v1215_v54  ;;  %v1218_v60 = vpop.f32.mrb[2].mxu1  ;;  %v1197_v62 = vpop.f32.mrb[3].mxu0  ;;  %v1453_v54 = vld [vmem:[#allocation14 + $0x38] sm:$0xff]   ;;  %v1159_v55 = vld [vmem:[%s1914_s10] ss:$0 sm:$0xff]  ;;  %s1608_s10 = scalar_lea.vmem %s1084_s30, 128 }
 0x175   :  { %v1219_v63 = vpop.f32.mrb[3].mxu1  ;;  %p1609_p0 = scmp.ne.s32.totalorder %s1084_s30, %s1608_s10  ;;  %p1614_p2 = scmp.lt.s32.totalorder %s1608_s10, %s1608_s10 }
 0x176   :  { %v492_v0 = vadd.f32 %v1217_v58, %v1195_v57  ;;  %v1168_v63 = vld [vmem:[%s1916_s12] ss:$0 sm:$0xff] }
 0x177   :  { %p1615_p3 = por %p1614_p2, %p1613_p1 }
 0x178   :  { %v510_v1 = vadd.f32 %v1131_v61, %v492_v0 }
 0x179   :  { %p1616_p4 = pnand %p1615_p3, %p1609_p0 }
 0x17a   :  { %v511_v2 = vmax.f32 %v510_v1, 0.0 }
 0x17c   :  { %v512_v3 = vpack.c.bf16 %v511_v2, %v511_v2 }
 0x17e   :  { %1283 = vmatmul.mubr.bf16.vlgmr.msra.gmra.mrb[4].mxu0 %v512_v3 }
 0x17f   :  { %1322 = vmatprep.mubr.msk.bf16.mxu0 %vm1650_vm0, %v1649_v39  ;;  %1307 = vmatpush3.bf16.msra.mxu0 %v1430_v6 }
 0x180   :  { %1308 = vmatprep.subr.bf16.mxu0 %v1649_v39 }
 0x183   :  { %1309 = vmatpush3.bf16.msra.mxu0 %v1431_v7 }
 0x184   :  { %1310 = vmatprep.subr.bf16.mxu0 %v1649_v39 }
 0x187   :  { %1311 = vmatpush3.bf16.msra.mxu0 %v1432_v8 }
 0x188   :  { %1312 = vmatprep.subr.bf16.mxu0 %v1649_v39 }
 0x18b   :  { %1313 = vmatpush3.bf16.msra.mxu0 %v1433_v9 }
 0x18c   :  { %1314 = vmatprep.subr.bf16.mxu0 %v1649_v39 }
 0x18f   :  { %1315 = vmatpush3.bf16.msra.mxu0 %v1434_v10 }
 0x190   :  { %1316 = vmatprep.subr.bf16.mxu0 %v1649_v39 }
 0x193   :  { %1317 = vmatpush3.bf16.msra.mxu0 %v1435_v11 }
 0x194   :  { %1318 = vmatprep.subr.bf16.mxu0 %v1649_v39 }
 0x197   :  { %1319 = vmatpush3.bf16.msra.mxu0 %v1436_v20 }
 0x198   :  { %1320 = vmatprep.subr.bf16.mxu0 %v1649_v39 }
 0x19b   :  { %1321 = vmatpush3.bf16.msra.mxu0 %v1437_v21 }
 0x19c   :  { %1346 = vmatprep.subr.bf16.mxu0 %v1649_v39 }
 0x251   :  { %v618_v13 = vpop.f32.mrb[4].mxu0 }
 0x252   :  { %v619_v14 = vadd.f32 %v1132_v12, %v618_v13  ;;  %v1284_v15 = vpop.f32.mrb[5].mxu0 }
 0x253   :  { %v621_v16 = vpop.f32.mrb[6].mxu0 }
 0x254   :  { %v624_v17 = vmax.f32 %v619_v14, 0.0  ;;  %v1285_v18 = vpop.f32.mrb[7].mxu0 }
 0x256   :  { %v625_v19 = vpack.c.bf16 %v624_v17, %v624_v17 }
 0x258   :  { %1303 = vmatmul.mubr.bf16.vlgmr.msra.gmra.mrb[4].mxu1 %v625_v19 }
 0x259   :  { %1342 = vmatprep.mubr.msk.bf16.mxu1 %vm1650_vm0, %v1649_v39  ;;  %1327 = vmatpush3.bf16.msra.mxu1 %v1438_v22 }
 0x25a   :  { %1328 = vmatprep.subr.bf16.mxu1 %v1649_v39 }
 0x25d   :  { %1329 = vmatpush3.bf16.msra.mxu1 %v1439_v23 }
 0x25e   :  { %1330 = vmatprep.subr.bf16.mxu1 %v1649_v39 }
 0x261   :  { %1331 = vmatpush3.bf16.msra.mxu1 %v1440_v24 }
 0x262   :  { %1332 = vmatprep.subr.bf16.mxu1 %v1649_v39 }
 0x265   :  { %1333 = vmatpush3.bf16.msra.mxu1 %v1441_v25 }
 0x266   :  { %1334 = vmatprep.subr.bf16.mxu1 %v1649_v39 }
 0x269   :  { %1335 = vmatpush3.bf16.msra.mxu1 %v1442_v26 }
 0x26a   :  { %1336 = vmatprep.subr.bf16.mxu1 %v1649_v39 }
 0x26d   :  { %1337 = vmatpush3.bf16.msra.mxu1 %v1443_v27 }
 0x26e   :  { %1338 = vmatprep.subr.bf16.mxu1 %v1649_v39 }
 0x271   :  { %1339 = vmatpush3.bf16.msra.mxu1 %v1444_v36 }
 0x272   :  { %1340 = vmatprep.subr.bf16.mxu1 %v1649_v39 }
 0x275   :  { %1341 = vmatpush3.bf16.msra.mxu1 %v1445_v37 }
 0x32b   :  { %v731_v29 = vpop.f32.mrb[4].mxu1 }
 0x32c   :  { %v732_v30 = vadd.f32 %v1141_v28, %v731_v29  ;;  %v1304_v31 = vpop.f32.mrb[5].mxu1 }
 0x32d   :  { %v734_v32 = vpop.f32.mrb[6].mxu1 }
 0x32e   :  { %v737_v33 = vmax.f32 %v732_v30, 0.0  ;;  %v1305_v34 = vpop.f32.mrb[7].mxu1 }
 0x330   :  { %v738_v35 = vpack.c.bf16 %v737_v33, %v737_v33 }
 0x332   :  { %1323 = vmatmul.mubr.bf16.vlgmr.msra.gmra.mrb[8].mxu0 %v738_v35 }
 0x333   :  { %1362 = vmatprep.mubr.msk.bf16.mxu0 %vm1650_vm0, %v1649_v39  ;;  %1347 = vmatpush3.bf16.msra.mxu0 %v1446_v38 }
 0x334   :  { %1348 = vmatprep.subr.bf16.mxu0 %v1649_v39 }
 0x337   :  { %1349 = vmatpush3.bf16.msra.mxu0 %v1447_v40 }
 0x338   :  { %1350 = vmatprep.subr.bf16.mxu0 %v1649_v39 }
 0x33b   :  { %1351 = vmatpush3.bf16.msra.mxu0 %v1448_v41 }
 0x33c   :  { %1352 = vmatprep.subr.bf16.mxu0 %v1649_v39 }
 0x33f   :  { %1353 = vmatpush3.bf16.msra.mxu0 %v1449_v42 }
 0x340   :  { %1354 = vmatprep.subr.bf16.mxu0 %v1649_v39 }
 0x343   :  { %1355 = vmatpush3.bf16.msra.mxu0 %v1450_v43 }
 0x344   :  { %1356 = vmatprep.subr.bf16.mxu0 %v1649_v39 }
 0x347   :  { %1357 = vmatpush3.bf16.msra.mxu0 %v1451_v44 }
 0x348   :  { %1358 = vmatprep.subr.bf16.mxu0 %v1649_v39 }
 0x34b   :  { %1359 = vmatpush3.bf16.msra.mxu0 %v1452_v53 }
 0x34c   :  { %1360 = vmatprep.subr.bf16.mxu0 %v1649_v39 }
 0x34f   :  { %1361 = vmatpush3.bf16.msra.mxu0 %v1453_v54 }
 0x405   :  { %v844_v46 = vpop.f32.mrb[8].mxu0 }
 0x406   :  { %v845_v47 = vadd.f32 %v1150_v45, %v844_v46  ;;  %v1324_v48 = vpop.f32.mrb[9].mxu0 }
 0x407   :  { %v847_v49 = vpop.f32.mrb[10].mxu0 }
 0x408   :  { %v850_v50 = vmax.f32 %v845_v47, 0.0  ;;  %v1325_v51 = vpop.f32.mrb[11].mxu0 }
 0x40a   :  { %v851_v52 = vpack.c.bf16 %v850_v50, %v850_v50 }
 0x40c   :  { %1343 = vmatmul.mubr.bf16.vlgmr.msra.gmra.mrb[8].mxu1 %v851_v52 }
 0x4df   :  { %v957_v56 = vpop.f32.mrb[8].mxu1 }
 0x4e0   :  { %v958_v57 = vadd.f32 %v1159_v55, %v957_v56  ;;  %v1344_v58 = vpop.f32.mrb[9].mxu1 }
 0x4e1   :  { %v960_v59 = vpop.f32.mrb[10].mxu1 }
 0x4e2   :  { %v963_v60 = vmax.f32 %v958_v57, 0.0  ;;  %v1345_v61 = vpop.f32.mrb[11].mxu1 }
 0x4e4   :  { %v964_v62 = vpack.c.bf16 %v963_v60, %v963_v60 }
 0x4e6   :  { %1363 = vmatmul.mubr.bf16.vlgmr.msra.gmra.mrb[12].mxu0 %v964_v62 }
 0x5b9   :  { %v1070_v39 = vpop.f32.mrb[12].mxu0 }
 0x5ba   :  { %v1071_v0 = vadd.f32 %v1168_v63, %v1070_v39  ;;  %v1364_v1 = vpop.f32.mrb[13].mxu0 }
 0x5bb   :  { %v1073_v2 = vpop.f32.mrb[14].mxu0 }
 0x5bc   :  { %1076 = vst [vmem:[#allocation15] sm:$0xff] %v1071_v0  ;;  %v1365_v3 = vpop.f32.mrb[15].mxu0 }
 0x5bd   :  { %1619 = shalt.err (!%p1616_p4)
}
 0x5be   :  { %s1620_s12 = scalar_lea.hbm %s1917_s13, 128 }
 0x5bf   :  { %p1621_p5 = scmp.ne.s32.totalorder %s1917_s13, %s1620_s12  ;;  %p1624_p6 = scmp.lt.u32.totalorder %s1620_s12, %s1917_s13 }
 0x5c1   :  { %p1626_p7 = pnand %p1624_p6, %p1621_p5 }
 0x5c3   :  { %1629 = shalt.err (!%p1626_p7)
}
 0x5c4   :  { %1086 = dma.vmem_to_hbm [thread:$0]  %s1084_s30, 128, %s1917_s13, [#allocation5]  }
 0x5c5   :  { %1638 = dma.done.wait [#allocation5], 128  }
 0x5c6   :  { %1639 = vsyncadd [#allocation5], 4294967168 }
 0x5c7   :  { %1090 = vsyncpa [#allocation4], 1 }
 0x5c8   :  { %1091 = vsyncpa [#allocation7], 1 }
 0x5c9   :  { %1092 = vsyncpa [#allocation10], 1 }
 0x5ca   :  { %1093 = vsyncpa [#allocation13], 1 }
 0x5cb   :  { %1094 = vsyncpa [#allocation5], 1 }

</bundles_post_ra>
